<compile_context>
chip_gen: v7x
topology: tpu7x:2x2x1
jax: 0.10.0
libtpu: 0.0.40
codegen_flags: <defaults>
</compile_context>

<pallas_src>
import functools

import jax
import jax.numpy as jnp
from jax import lax
from jax.experimental import pallas as pl
from jax.experimental.pallas import tpu as pltpu

# "contract the last dim of both operands" (A @ B^T) -- same dimension numbers
# the reference Pallas flash-attention TPU kernel uses.
_TRANS_B = (((1,), (1,)), ((), ()))


def attn_block_kernel(x_ref, gred_ref, pack_ref, wqkv_ref, bqkv_ref, wp_ref,
                      out_ref, q_s, k_s, v_s,
                      *, channels, tq, cn, denom, eps, approx_recip):
    """One (batch, query-tile) grid step.

    At the first query tile of each batch, GroupNorm + the fused QKV projection
    run in N-chunks of `cn` tokens and are stashed (bf16) in VMEM scratch;
    every query tile then attends over the resident K/V.
    """
    C = channels
    N = q_s.shape[0]
    num_chunks = N // cn
    qi = pl.program_id(1)

    # ---- first query tile of each batch: GroupNorm + fused QKV -> scratch ----
    @pl.when(qi == 0)
    def _compute_qkv():
        def chunk(i):
            start = pl.multiple_of(i * cn, cn)
            return x_ref[0, pl.ds(start, cn), :]                  # (cn, C) f32

        # Two-pass (centered) GroupNorm stats, reduced per group with a (C, G)
        # one-hot matrix; broadcast back via the transposed contraction.
        def sum_body(i, acc):
            return acc + jnp.sum(chunk(i), axis=0, keepdims=True)
        s = lax.fori_loop(0, num_chunks, sum_body,
                          jnp.zeros((1, C), jnp.float32))         # (1, C)
        gsum = jnp.dot(s, gred_ref[...], preferred_element_type=jnp.float32)
        mean_g = gsum * (1.0 / denom)                             # (1, G)
        mean = lax.dot_general(mean_g, gred_ref[...], _TRANS_B,
                               preferred_element_type=jnp.float32)  # (1, C)

        def ssq_body(i, acc):
            cx = chunk(i) - mean
            return acc + jnp.sum(cx * cx, axis=0, keepdims=True)
        ss = lax.fori_loop(0, num_chunks, ssq_body,
                           jnp.zeros((1, C), jnp.float32))        # (1, C)
        gss = jnp.dot(ss, gred_ref[...], preferred_element_type=jnp.float32)
        inv_g = lax.rsqrt(gss * (1.0 / denom) + eps)              # (1, G)
        inv = lax.dot_general(inv_g, gred_ref[...], _TRANS_B,
                              preferred_element_type=jnp.float32)   # (1, C)

        gamma = pack_ref[0:1, :]
        beta = pack_ref[1:2, :]
        row_scale = inv * gamma                                   # (1, C)
        row_shift = beta - mean * row_scale                       # (1, C)

        # Chunked affine + fused QKV matmul: only (cn, C) + (cn, 3C) f32 are
        # live at once (instead of (N, C) + (N, 3C)).
        @pl.loop(0, num_chunks)
        def _(i):
            start = pl.multiple_of(i * cn, cn)
            h = chunk(i) * row_scale + row_shift                  # (cn, C) f32
            qkv = jnp.dot(h.astype(jnp.bfloat16), wqkv_ref[...],
                          preferred_element_type=jnp.float32) + bqkv_ref[...]
            # 1/sqrt(C) is already folded into the q columns of wqkv/bqkv.
            q_s[pl.ds(start, cn), :] = qkv[:, 0:C].astype(jnp.bfloat16)
            k_s[pl.ds(start, cn), :] = qkv[:, C:2 * C].astype(jnp.bfloat16)
            v_s[pl.ds(start, cn), :] = qkv[:, 2 * C:3 * C].astype(jnp.bfloat16)

    # ---- per query tile: attention over all keys (k/v resident in scratch) ----
    start = pl.multiple_of(qi * tq, tq)
    x_tile = x_ref[0, pl.ds(start, tq), :]                        # (tq, C) f32 residual
    q_tile = q_s[pl.ds(start, tq), :]                             # (tq, C) bf16

    # scores = q_tile @ k^T (native transposed-RHS MXU matmul; no XLU k.T).
    scores = lax.dot_general(q_tile, k_s[...], _TRANS_B,
                             preferred_element_type=jnp.float32)  # (tq, N)
    m = jnp.max(scores, axis=-1, keepdims=True)
    p = jnp.exp(scores - m)                                       # unnormalized softmax
    l = jnp.sum(p, axis=-1, keepdims=True)                        # (tq, 1)

    att = jnp.dot(p.astype(jnp.bfloat16), v_s[...],
                  preferred_element_type=jnp.float32)             # (tq, C)
    # Normalize after p@v (O(N*C) instead of O(N^2)).  Approx reciprocal is a
    # documented precision choice (EUP slot, ~1e-3 rel error); exact available.
    if approx_recip:
        att = att * pl.reciprocal(l, approx=True)
    else:
        att = att / l

    out = jnp.dot(att.astype(jnp.bfloat16), wp_ref[...],
                  preferred_element_type=jnp.float32) + pack_ref[2:3, :]
    out_ref[0] = x_tile + out


def _pick_chunk(n_tokens, max_chunk=512):
    """Largest divisor of N (<= max_chunk) for the GroupNorm/QKV chunk loop."""
    if n_tokens <= max_chunk:
        return n_tokens
    for step in (16, 8):
        best = None
        for t in range(step, max_chunk + 1, step):
            if n_tokens % t == 0:
                best = t
        if best is not None:
            return best
    return n_tokens


def _pick_tq(n_tokens, score_budget_bytes):
    """Query-tile size.

    Prefers MXU-friendly multiples (256, then 128) whose live score
    temporaries (~10 * tq * N bytes: f32 scores + f32 p + bf16 p) fit the
    budget; otherwise the largest fitting multiple-of-8 divisor; and if
    nothing fits, the SMALLEST divisor (never the full N)."""
    divs = [t for t in range(8, n_tokens + 1, 8) if n_tokens % t == 0]
    if not divs:
        return n_tokens
    fits = lambda t: 10 * t * n_tokens <= score_budget_bytes
    for align in (256, 128):
        cand = [t for t in divs if t % align == 0 and fits(t)]
        if cand:
            return max(cand)
    cand = [t for t in divs if fits(t)]
    return max(cand) if cand else min(divs)


def attn_block(x, params, *, num_groups=16, eps=1e-6, tq=None,
               exact_softmax_recip=False):
    """x: (B, C, D, H, W) float32 (NCDHW, matching the PyTorch Conv3d module)."""
    B, C, D, H, W = x.shape
    N = D * H * W
    assert C % num_groups == 0
    cg = C // num_groups

    # Chip VMEM (fallback: the smallest real part, v7x's 64 MiB per TC).
    try:
        phys_vmem = int(pltpu.get_tpu_info().vmem_capacity_bytes)
    except Exception:
        phys_vmem = 64 << 20
    small_vmem = phys_vmem <= (64 << 20)

    if tq is None:
        tq = _pick_tq(N, (4 << 20) if small_vmem else (8 << 20))
    assert N % tq == 0 and (tq % 8 == 0 or tq == N)
    nq = N // tq
    cn = _pick_chunk(N)
    assert N % cn == 0

    # token-major layout (B, N, C).
    # NOTE: for end-to-end throughput keep neighbouring ops token-major to skip
    # these two full-HBM transpose passes; kept here to match the NCDHW spec.
    x_bnc = jnp.transpose(x.reshape(B, C, N), (0, 2, 1)).astype(jnp.float32)

    # group-membership one-hot (C, G): channel c belongs to group c // cg.
    g_id = jnp.arange(C) // cg
    gred = (g_id[:, None] == jnp.arange(num_groups)[None, :]).astype(jnp.float32)

    # tiny per-channel params packed into one (8, C) tensor (one DMA channel).
    pack = jnp.zeros((8, C), jnp.float32)
    pack = pack.at[0].set(params["gamma"]).at[1].set(params["beta"])
    pack = pack.at[2].set(params["bp"])

    # fused QKV weights/bias (Cin, 3C) with the 1/sqrt(C) softmax scale folded
    # into the q columns (removes an (N, C) multiply pass in the kernel).
    scale = float(C) ** (-0.5)
    wqkv = jnp.concatenate(
        [params["wq"].T * scale, params["wk"].T, params["wv"].T], axis=1
    ).astype(jnp.bfloat16)                                        # (C, 3C)
    bqkv = jnp.concatenate(
        [params["bq"] * scale, params["bk"], params["bv"]]
    ).reshape(1, 3 * C).astype(jnp.float32)                       # (1, 3C)
    wp_t = params["wp"].T.astype(jnp.bfloat16)                    # (C, C)

    # NOTE: if C < 128 (lane width), padding C to 128 (or batching several
    # blocks side by side) would avoid wasting lanes/MXU columns.

    kernel = functools.partial(
        attn_block_kernel, channels=C, tq=tq, cn=cn,
        denom=float(N * cg), eps=float(eps),
        approx_recip=not exact_softmax_recip)

    # VMEM budget from the actual footprint + Mosaic-internal headroom,
    # clamped below physical capacity (replaces the old flat 85% heuristic).
    x_bufs = 1 if small_vmem else 2
    weights_bytes = (3 * C * C + C * C) * 2 + (C * num_groups + 8 * C + 3 * C) * 4
    footprint = (
        x_bufs * N * C * 4           # resident x block(s)
        + 3 * N * C * 2              # q/k/v bf16 scratch
        + 2 * tq * C * 4             # double-buffered output tile
        + weights_bytes              # (single-buffered) weights/params
        + 10 * tq * N                # scores/p temporaries per query tile
        + 2 * cn * 4 * C * 4         # chunked GroupNorm+QKV temporaries
    )
    vmem_limit = max(footprint + (16 << 20), 32 << 20)
    vmem_limit = min(vmem_limit, phys_vmem - (2 << 20))

    compiler_params = pltpu.CompilerParams(
        dimension_semantics=("parallel", "arbitrary"),
        vmem_limit_bytes=int(vmem_limit))
    out_shape = jax.ShapeDtypeStruct((B, N, C), jnp.float32)
    scratch_shapes = [
        pltpu.VMEM((N, C), jnp.bfloat16),   # q (scale pre-folded)
        pltpu.VMEM((N, C), jnp.bfloat16),   # k
        pltpu.VMEM((N, C), jnp.bfloat16),   # v
    ]

    # TODO(synk): add a K/V-streaming (online-softmax) fallback for shapes where
    # x + 3x(N,C) bf16 scratch no longer fit v7x's 64 MiB VMEM, and hoist the
    # GroupNorm+QKV stage into its own pallas_call so the query axis can be
    # marked "parallel" for 2-TC v7x when B == 1.

    def build_and_run(single_buffer_consts):
        def const_spec(shape):
            kw = ({"pipeline_mode": pl.Buffered(1)}
                  if single_buffer_consts else {})
            return pl.BlockSpec(shape, lambda b, q: (0,) * len(shape), **kw)

        x_kw = ({"pipeline_mode": pl.Buffered(1)}
                if (single_buffer_consts and small_vmem) else {})
        grid_spec = pltpu.PrefetchScalarGridSpec(
            num_scalar_prefetch=0,
            grid=(B, nq),
            in_specs=[
                pl.BlockSpec((1, N, C), lambda b, q: (b, 0, 0), **x_kw),  # x
                const_spec((C, num_groups)),                   # group one-hot
                const_spec((8, C)),                            # gamma/beta/bp
                const_spec((C, 3 * C)),                        # wqkv (bf16)
                const_spec((1, 3 * C)),                        # bqkv
                const_spec((C, C)),                            # wp (bf16)
            ],
            out_specs=pl.BlockSpec((1, tq, C), lambda b, q: (b, q, 0)),
            scratch_shapes=scratch_shapes,
        )
        return pl.pallas_call(
            kernel, out_shape=out_shape, grid_spec=grid_spec,
            compiler_params=compiler_params,
        )(x_bnc, gred, pack, wqkv, bqkv, wp_t)

    try:
        # Buffered(1) on constant-index operands (and on x for <=64 MiB parts):
        # their block index never changes, so a second pipeline buffer is dead
        # VMEM.
        out_bnc = jax.block_until_ready(build_and_run(True))
    except Exception:
        # pipeline_mode / Buffered(1) unsupported on this jax: fall back to the
        # default double buffering (correctness unaffected).
        out_bnc = build_and_run(False)

    # back to NCDHW
    return jnp.transpose(out_bnc, (0, 2, 1)).reshape(B, C, D, H, W)


def attn_block_reference(x, params, *, num_groups=16, eps=1e-6):
    """Pure-JAX fp32 reference mirroring the PyTorch forward (dim=3)."""
    B, C, D, H, W = x.shape
    N = D * H * W
    xg = x.reshape(B, num_groups, C // num_groups, N)
    mean = xg.mean(axis=(2, 3), keepdims=True)
    var = xg.var(axis=(2, 3), keepdims=True)
    h = ((xg - mean) / jnp.sqrt(var + eps)).reshape(B, C, N)
    h = h * params["gamma"][None, :, None] + params["beta"][None, :, None]

    lin = lambda w, b: jnp.einsum("oc,bcn->bon", w, h) + b[None, :, None]
    q = lin(params["wq"], params["bq"])
    k = lin(params["wk"], params["bk"])
    v = lin(params["wv"], params["bv"])

    qT = jnp.transpose(q, (0, 2, 1))                      # (B, N, C)
    w_ = jnp.einsum("bnc,bcm->bnm", qT, k) * (float(C) ** -0.5)
    w_ = jax.nn.softmax(w_, axis=2)
    h_ = jnp.einsum("bcj,bij->bci", v, w_)                # bmm(v, w_^T)
    h_ = (jnp.einsum("oc,bcn->bon", params["wp"], h_)
          + params["bp"][None, :, None])
    return x + h_.reshape(B, C, D, H, W)


if __name__ == "__main__":
    B, C, D, H, W = 2, 32, 4, 4, 4
    key = jax.random.PRNGKey(0)
    keys = jax.random.split(key, 10)

    x = jax.random.normal(keys[0], (B, C, D, H, W), dtype=jnp.float32)

    def init_w(k):
        return jax.random.normal(k, (C, C), dtype=jnp.float32) * 0.05

    params = {
        "gamma": 1.0 + 0.1 * jax.random.normal(keys[1], (C,), dtype=jnp.float32),
        "beta": 0.1 * jax.random.normal(keys[2], (C,), dtype=jnp.float32),
        "wq": init_w(keys[3]), "bq": 0.01 * jax.random.normal(keys[4], (C,)),
        "wk": init_w(keys[5]), "bk": 0.01 * jax.random.normal(keys[6], (C,)),
        "wv": init_w(keys[7]), "bv": 0.01 * jax.random.normal(keys[8], (C,)),
        "wp": init_w(keys[9]), "bp": jnp.zeros((C,), dtype=jnp.float32),
    }
    params = {k: v.astype(jnp.float32) for k, v in params.items()}

    # tq=16 -> grid (B=2, N/tq=4): exercises the query-tiled path and the
    # chunked GroupNorm+QKV path (single chunk at this tiny N).
    out = attn_block(x, params, tq=16)
    out = jax.block_until_ready(out)

    ref = attn_block_reference(x, params)
    assert out.shape == (B, C, D, H, W)
    err = float(jnp.max(jnp.abs(out - ref)))
    # bf16 MXU operands + approx reciprocal => compare against fp32 ref loosely.
    assert jnp.allclose(out, ref, atol=1e-2, rtol=1e-2), err

    print("KERNEL_OK")
</pallas_src>

<mosaic_0001>
module attributes {stable_mosaic.version = 11 : i64} {
  func.func @attn_block_kernel(%arg0: i32, %arg1: i32, %arg2: memref<1x64x32xf32, #tpu.memory_space<vmem>>, %arg3: memref<32x16xf32, #tpu.memory_space<vmem>>, %arg4: memref<8x32xf32, #tpu.memory_space<vmem>>, %arg5: memref<32x96xbf16, #tpu.memory_space<vmem>>, %arg6: memref<1x96xf32, #tpu.memory_space<vmem>>, %arg7: memref<32x32xbf16, #tpu.memory_space<vmem>>, %arg8: memref<1x16x32xf32, #tpu.memory_space<vmem>>, %arg9: memref<64x32xbf16, #tpu.memory_space<vmem>>, %arg10: memref<64x32xbf16, #tpu.memory_space<vmem>>, %arg11: memref<64x32xbf16, #tpu.memory_space<vmem>>) attributes {dimension_semantics = [#tpu.dimension_semantics<parallel>, #tpu.dimension_semantics<arbitrary>], iteration_bounds = array<i64: 2, 4>, scalar_prefetch = 0 : i64, scratch_operands = 3 : i64, tpu.core_type = #tpu.core_type<tc>, window_params = [{pipeline_mode = #tpu.pipeline_mode<synchronous>, transform_indices = @transform_0, window_bounds = array<i64: 1, 64, 32>}, {pipeline_mode = #tpu.pipeline_mode<synchronous>, transform_indices = @transform_1, window_bounds = array<i64: 32, 16>}, {pipeline_mode = #tpu.pipeline_mode<synchronous>, transform_indices = @transform_2, window_bounds = array<i64: 8, 32>}, {pipeline_mode = #tpu.pipeline_mode<synchronous>, transform_indices = @transform_3, window_bounds = array<i64: 32, 96>}, {pipeline_mode = #tpu.pipeline_mode<synchronous>, transform_indices = @transform_4, window_bounds = array<i64: 1, 96>}, {pipeline_mode = #tpu.pipeline_mode<synchronous>, transform_indices = @transform_5, window_bounds = array<i64: 32, 32>}, {transform_indices = @transform_6, window_bounds = array<i64: 1, 16, 32>}]} {
    %c0_i32 = arith.constant 0 : i32
    %0 = arith.cmpi eq, %arg1, %c0_i32 : i32
    %1 = arith.extui %0 : i1 to i32
    %c0_i32_0 = arith.constant 0 : i32
    %2 = arith.cmpi ne, %1, %c0_i32_0 : i32
    scf.if %2 {
      %cst_17 = arith.constant 0.000000e+00 : f32
      %35 = vector.broadcast %cst_17 : f32 to vector<1x32xf32>
      %c0_i32_18 = arith.constant 0 : i32
      %c64_i32 = arith.constant 64 : i32
      %36 = arith.muli %c0_i32_18, %c64_i32 : i32
      %37 = tpu.assume_multiple %36, 64 : i32
      %c0_19 = arith.constant 0 : index
      %38 = arith.index_cast %37 : i32 to index
      %c0_20 = arith.constant 0 : index
      %39 = vector.load %arg2[%c0_19, %38, %c0_20] : memref<1x64x32xf32, #tpu.memory_space<vmem>>, vector<1x64x32xf32>
      %40 = vector.shape_cast %39 : vector<1x64x32xf32> to vector<64x32xf32>
      %cst_21 = arith.constant dense<0.000000e+00> : vector<32xf32>
      %41 = vector.multi_reduction <add>, %40, %cst_21 [0] : vector<64x32xf32> to vector<32xf32>
      %42 = vector.shape_cast %41 : vector<32xf32> to vector<1x32xf32>
      %43 = arith.addf %35, %42 : vector<1x32xf32>
      %c1_i32 = arith.constant 1 : i32
      %c0_22 = arith.constant 0 : index
      %c0_23 = arith.constant 0 : index
      %44 = vector.load %arg3[%c0_22, %c0_23] : memref<32x16xf32, #tpu.memory_space<vmem>>, vector<32x16xf32>
      %cst_24 = arith.constant dense<0.000000e+00> : vector<1x16xf32>
      %45 = tpu.matmul %43, %44, %cst_24 {dimension_numbers = #tpu.dot_dimension_numbers<[1], [0], [0], [1], [0, 0, 1, 1], [], []>} : vector<1x32xf32>, vector<32x16xf32>, vector<1x16xf32> -> vector<1x16xf32>
      %cst_25 = arith.constant 7.812500e-03 : f32
      %46 = vector.broadcast %cst_25 : f32 to vector<1x16xf32>
      %47 = arith.mulf %45, %46 : vector<1x16xf32>
      %c0_26 = arith.constant 0 : index
      %c0_27 = arith.constant 0 : index
      %48 = vector.load %arg3[%c0_26, %c0_27] : memref<32x16xf32, #tpu.memory_space<vmem>>, vector<32x16xf32>
      %cst_28 = arith.constant dense<0.000000e+00> : vector<1x32xf32>
      %49 = tpu.matmul %47, %48, %cst_28 {dimension_numbers = #tpu.dot_dimension_numbers<[1], [1], [0], [0], [0, 0, 1, 0], [], []>} : vector<1x16xf32>, vector<32x16xf32>, vector<1x32xf32> -> vector<1x32xf32>
      %cst_29 = arith.constant 0.000000e+00 : f32
      %50 = vector.broadcast %cst_29 : f32 to vector<1x32xf32>
      %c0_i32_30 = arith.constant 0 : i32
      %c64_i32_31 = arith.constant 64 : i32
      %51 = arith.muli %c0_i32_30, %c64_i32_31 : i32
      %52 = tpu.assume_multiple %51, 64 : i32
      %c0_32 = arith.constant 0 : index
      %53 = arith.index_cast %52 : i32 to index
      %c0_33 = arith.constant 0 : index
      %54 = vector.load %arg2[%c0_32, %53, %c0_33] : memref<1x64x32xf32, #tpu.memory_space<vmem>>, vector<1x64x32xf32>
      %55 = vector.shape_cast %54 : vector<1x64x32xf32> to vector<64x32xf32>
      %56 = vector.broadcast %49 : vector<1x32xf32> to vector<64x32xf32>
      %57 = arith.subf %55, %56 : vector<64x32xf32>
      %58 = arith.mulf %57, %57 : vector<64x32xf32>
      %cst_34 = arith.constant dense<0.000000e+00> : vector<32xf32>
      %59 = vector.multi_reduction <add>, %58, %cst_34 [0] : vector<64x32xf32> to vector<32xf32>
      %60 = vector.shape_cast %59 : vector<32xf32> to vector<1x32xf32>
      %61 = arith.addf %50, %60 : vector<1x32xf32>
      %c1_i32_35 = arith.constant 1 : i32
      %c0_36 = arith.constant 0 : index
      %c0_37 = arith.constant 0 : index
      %62 = vector.load %arg3[%c0_36, %c0_37] : memref<32x16xf32, #tpu.memory_space<vmem>>, vector<32x16xf32>
      %cst_38 = arith.constant dense<0.000000e+00> : vector<1x16xf32>
      %63 = tpu.matmul %61, %62, %cst_38 {dimension_numbers = #tpu.dot_dimension_numbers<[1], [0], [0], [1], [0, 0, 1, 1], [], []>} : vector<1x32xf32>, vector<32x16xf32>, vector<1x16xf32> -> vector<1x16xf32>
      %cst_39 = arith.constant 7.812500e-03 : f32
      %64 = vector.broadcast %cst_39 : f32 to vector<1x16xf32>
      %65 = arith.mulf %63, %64 : vector<1x16xf32>
      %cst_40 = arith.constant 9.99999997E-7 : f32
      %66 = vector.broadcast %cst_40 : f32 to vector<1x16xf32>
      %67 = arith.addf %65, %66 : vector<1x16xf32>
      %68 = math.rsqrt %67 : vector<1x16xf32>
      %c0_41 = arith.constant 0 : index
      %c0_42 = arith.constant 0 : index
      %69 = vector.load %arg3[%c0_41, %c0_42] : memref<32x16xf32, #tpu.memory_space<vmem>>, vector<32x16xf32>
      %cst_43 = arith.constant dense<0.000000e+00> : vector<1x32xf32>
      %70 = tpu.matmul %68, %69, %cst_43 {dimension_numbers = #tpu.dot_dimension_numbers<[1], [1], [0], [0], [0, 0, 1, 0], [], []>} : vector<1x16xf32>, vector<32x16xf32>, vector<1x32xf32> -> vector<1x32xf32>
      %c0_44 = arith.constant 0 : index
      %c0_45 = arith.constant 0 : index
      %71 = vector.load %arg4[%c0_44, %c0_45] : memref<8x32xf32, #tpu.memory_space<vmem>>, vector<1x32xf32>
      %c1 = arith.constant 1 : index
      %c0_46 = arith.constant 0 : index
      %72 = vector.load %arg4[%c1, %c0_46] : memref<8x32xf32, #tpu.memory_space<vmem>>, vector<1x32xf32>
      %73 = arith.mulf %70, %71 : vector<1x32xf32>
      %74 = arith.mulf %49, %73 : vector<1x32xf32>
      %75 = arith.subf %72, %74 : vector<1x32xf32>
      %c0_i32_47 = arith.constant 0 : i32
      %c1_i32_48 = arith.constant 1 : i32
      %76 = arith.muli %c0_i32_47, %c1_i32_48 : i32
      %c0_i32_49 = arith.constant 0 : i32
      %77 = arith.addi %c0_i32_49, %76 : i32
      %c64_i32_50 = arith.constant 64 : i32
      %78 = arith.muli %77, %c64_i32_50 : i32
      %79 = tpu.assume_multiple %78, 64 : i32
      %c64_i32_51 = arith.constant 64 : i32
      %80 = arith.muli %77, %c64_i32_51 : i32
      %81 = tpu.assume_multiple %80, 64 : i32
      %c0_52 = arith.constant 0 : index
      %82 = arith.index_cast %81 : i32 to index
      %c0_53 = arith.constant 0 : index
      %83 = vector.load %arg2[%c0_52, %82, %c0_53] : memref<1x64x32xf32, #tpu.memory_space<vmem>>, vector<1x64x32xf32>
      %84 = vector.shape_cast %83 : vector<1x64x32xf32> to vector<64x32xf32>
      %85 = vector.broadcast %73 : vector<1x32xf32> to vector<64x32xf32>
      %86 = arith.mulf %84, %85 : vector<64x32xf32>
      %87 = vector.broadcast %75 : vector<1x32xf32> to vector<64x32xf32>
      %88 = arith.addf %86, %87 : vector<64x32xf32>
      %89 = arith.truncf %88 : vector<64x32xf32> to vector<64x32xbf16>
      %c0_54 = arith.constant 0 : index
      %c0_55 = arith.constant 0 : index
      %90 = vector.load %arg5[%c0_54, %c0_55] : memref<32x96xbf16, #tpu.memory_space<vmem>>, vector<32x96xbf16>
      %cst_56 = arith.constant dense<0.000000e+00> : vector<64x96xf32>
      %91 = tpu.matmul %89, %90, %cst_56 {dimension_numbers = #tpu.dot_dimension_numbers<[1], [0], [0], [1], [0, 0, 1, 1], [], []>} : vector<64x32xbf16>, vector<32x96xbf16>, vector<64x96xf32> -> vector<64x96xf32>
      %c0_57 = arith.constant 0 : index
      %c0_58 = arith.constant 0 : index
      %92 = vector.load %arg6[%c0_57, %c0_58] : memref<1x96xf32, #tpu.memory_space<vmem>>, vector<1x96xf32>
      %93 = vector.broadcast %92 : vector<1x96xf32> to vector<64x96xf32>
      %94 = arith.addf %91, %93 : vector<64x96xf32>
      %95 = vector.extract_strided_slice %94 {offsets = [0, 0], sizes = [64, 32], strides = [1, 1]} : vector<64x96xf32> to vector<64x32xf32>
      %96 = arith.truncf %95 : vector<64x32xf32> to vector<64x32xbf16>
      %97 = arith.index_cast %79 : i32 to index
      %c0_59 = arith.constant 0 : index
      %98 = vector.load %arg9[%97, %c0_59] : memref<64x32xbf16, #tpu.memory_space<vmem>>, vector<64x32xbf16>
      tpu.vector_store %arg9[%97, %c0_59], %96 {strides = array<i32>} : memref<64x32xbf16, #tpu.memory_space<vmem>>, vector<64x32xbf16>,
      %99 = vector.extract_strided_slice %94 {offsets = [0, 32], sizes = [64, 32], strides = [1, 1]} : vector<64x96xf32> to vector<64x32xf32>
      %100 = arith.truncf %99 : vector<64x32xf32> to vector<64x32xbf16>
      %101 = arith.index_cast %79 : i32 to index
      %c0_60 = arith.constant 0 : index
      %102 = vector.load %arg10[%101, %c0_60] : memref<64x32xbf16, #tpu.memory_space<vmem>>, vector<64x32xbf16>
      tpu.vector_store %arg10[%101, %c0_60], %100 {strides = array<i32>} : memref<64x32xbf16, #tpu.memory_space<vmem>>, vector<64x32xbf16>,
      %103 = vector.extract_strided_slice %94 {offsets = [0, 64], sizes = [64, 32], strides = [1, 1]} : vector<64x96xf32> to vector<64x32xf32>
      %104 = arith.truncf %103 : vector<64x32xf32> to vector<64x32xbf16>
      %105 = arith.index_cast %79 : i32 to index
      %c0_61 = arith.constant 0 : index
      %106 = vector.load %arg11[%105, %c0_61] : memref<64x32xbf16, #tpu.memory_space<vmem>>, vector<64x32xbf16>
      tpu.vector_store %arg11[%105, %c0_61], %104 {strides = array<i32>} : memref<64x32xbf16, #tpu.memory_space<vmem>>, vector<64x32xbf16>,
      %c1_i32_62 = arith.constant 1 : i32
    } else {
    }
    %c16_i32 = arith.constant 16 : i32
    %3 = arith.muli %arg1, %c16_i32 : i32
    %4 = tpu.assume_multiple %3, 16 : i32
    %c0 = arith.constant 0 : index
    %5 = arith.index_cast %4 : i32 to index
    %c0_1 = arith.constant 0 : index
    %6 = vector.load %arg2[%c0, %5, %c0_1] : memref<1x64x32xf32, #tpu.memory_space<vmem>>, vector<1x16x32xf32>
    %7 = vector.shape_cast %6 : vector<1x16x32xf32> to vector<16x32xf32>
    %8 = arith.index_cast %4 : i32 to index
    %c0_2 = arith.constant 0 : index
    %9 = vector.load %arg9[%8, %c0_2] : memref<64x32xbf16, #tpu.memory_space<vmem>>, vector<16x32xbf16>
    %c0_3 = arith.constant 0 : index
    %c0_4 = arith.constant 0 : index
    %10 = vector.load %arg10[%c0_3, %c0_4] : memref<64x32xbf16, #tpu.memory_space<vmem>>, vector<64x32xbf16>
    %cst = arith.constant dense<0.000000e+00> : vector<16x64xf32>
    %11 = tpu.matmul %9, %10, %cst {dimension_numbers = #tpu.dot_dimension_numbers<[1], [1], [0], [0], [0, 0, 1, 0], [], []>} : vector<16x32xbf16>, vector<64x32xbf16>, vector<16x64xf32> -> vector<16x64xf32>
    %cst_5 = arith.constant dense<0xFF800000> : vector<16xf32>
    %12 = vector.multi_reduction <maximumf>, %11, %cst_5 [1] : vector<16x64xf32> to vector<16xf32>
    %13 = vector.shape_cast %12 : vector<16xf32> to vector<16x1xf32>
    %14 = vector.broadcast %13 : vector<16x1xf32> to vector<16x64xf32>
    %15 = arith.subf %11, %14 : vector<16x64xf32>
    %16 = math.exp %15 : vector<16x64xf32>
    %cst_6 = arith.constant dense<0.000000e+00> : vector<16xf32>
    %17 = vector.multi_reduction <add>, %16, %cst_6 [1] : vector<16x64xf32> to vector<16xf32>
    %18 = vector.shape_cast %17 : vector<16xf32> to vector<16x1xf32>
    %19 = arith.truncf %16 : vector<16x64xf32> to vector<16x64xbf16>
    %c0_7 = arith.constant 0 : index
    %c0_8 = arith.constant 0 : index
    %20 = vector.load %arg11[%c0_7, %c0_8] : memref<64x32xbf16, #tpu.memory_space<vmem>>, vector<64x32xbf16>
    %cst_9 = arith.constant dense<0.000000e+00> : vector<16x32xf32>
    %21 = tpu.matmul %19, %20, %cst_9 {dimension_numbers = #tpu.dot_dimension_numbers<[1], [0], [0], [1], [0, 0, 1, 1], [], []>} : vector<16x64xbf16>, vector<64x32xbf16>, vector<16x32xf32> -> vector<16x32xf32>
    %22 = tpu.reciprocal %18 {approx = true} : vector<16x1xf32> -> vector<16x1xf32>
    %23 = vector.broadcast %22 : vector<16x1xf32> to vector<16x32xf32>
    %24 = arith.mulf %21, %23 : vector<16x32xf32>
    %25 = arith.truncf %24 : vector<16x32xf32> to vector<16x32xbf16>
    %c0_10 = arith.constant 0 : index
    %c0_11 = arith.constant 0 : index
    %26 = vector.load %arg7[%c0_10, %c0_11] : memref<32x32xbf16, #tpu.memory_space<vmem>>, vector<32x32xbf16>
    %cst_12 = arith.constant dense<0.000000e+00> : vector<16x32xf32>
    %27 = tpu.matmul %25, %26, %cst_12 {dimension_numbers = #tpu.dot_dimension_numbers<[1], [0], [0], [1], [0, 0, 1, 1], [], []>} : vector<16x32xbf16>, vector<32x32xbf16>, vector<16x32xf32> -> vector<16x32xf32>
    %c2 = arith.constant 2 : index
    %c0_13 = arith.constant 0 : index
    %28 = vector.load %arg4[%c2, %c0_13] : memref<8x32xf32, #tpu.memory_space<vmem>>, vector<1x32xf32>
    %29 = vector.broadcast %28 : vector<1x32xf32> to vector<16x32xf32>
    %30 = arith.addf %27, %29 : vector<16x32xf32>
    %31 = arith.addf %7, %30 : vector<16x32xf32>
    %c0_14 = arith.constant 0 : index
    %c0_15 = arith.constant 0 : index
    %c0_16 = arith.constant 0 : index
    %32 = vector.load %arg8[%c0_14, %c0_15, %c0_16] : memref<1x16x32xf32, #tpu.memory_space<vmem>>, vector<1x16x32xf32>
    %33 = vector.shape_cast %32 : vector<1x16x32xf32> to vector<16x32xf32>
    %34 = vector.shape_cast %31 : vector<16x32xf32> to vector<1x16x32xf32>
    tpu.vector_store %arg8[%c0_14, %c0_15, %c0_16], %34 {strides = array<i32>} : memref<1x16x32xf32, #tpu.memory_space<vmem>>, vector<1x16x32xf32>,
    return
  }
  func.func @transform_0(%arg0: i32, %arg1: i32) -> (i32, i32, i32) {
    %c0_i32 = arith.constant 0 : i32
    %c0_i32_0 = arith.constant 0 : i32
    %c0_i32_1 = arith.constant 0 : i32
    return %arg0, %c0_i32, %c0_i32_0 : i32, i32, i32
  }
  func.func @transform_1(%arg0: i32, %arg1: i32) -> (i32, i32) {
    %c0_i32 = arith.constant 0 : i32
    %c0_i32_0 = arith.constant 0 : i32
    %c0_i32_1 = arith.constant 0 : i32
    return %c0_i32, %c0_i32_0 : i32, i32
  }
  func.func @transform_2(%arg0: i32, %arg1: i32) -> (i32, i32) {
    %c0_i32 = arith.constant 0 : i32
    %c0_i32_0 = arith.constant 0 : i32
    %c0_i32_1 = arith.constant 0 : i32
    return %c0_i32, %c0_i32_0 : i32, i32
  }
  func.func @transform_3(%arg0: i32, %arg1: i32) -> (i32, i32) {
    %c0_i32 = arith.constant 0 : i32
    %c0_i32_0 = arith.constant 0 : i32
    %c0_i32_1 = arith.constant 0 : i32
    return %c0_i32, %c0_i32_0 : i32, i32
  }
  func.func @transform_4(%arg0: i32, %arg1: i32) -> (i32, i32) {
    %c0_i32 = arith.constant 0 : i32
    %c0_i32_0 = arith.constant 0 : i32
    %c0_i32_1 = arith.constant 0 : i32
    return %c0_i32, %c0_i32_0 : i32, i32
  }
  func.func @transform_5(%arg0: i32, %arg1: i32) -> (i32, i32) {
    %c0_i32 = arith.constant 0 : i32
    %c0_i32_0 = arith.constant 0 : i32
    %c0_i32_1 = arith.constant 0 : i32
    return %c0_i32, %c0_i32_0 : i32, i32
  }
  func.func @transform_6(%arg0: i32, %arg1: i32) -> (i32, i32, i32) {
    %c0_i32 = arith.constant 0 : i32
    %c0_i32_0 = arith.constant 0 : i32
    return %arg0, %arg1, %c0_i32 : i32, i32, i32
  }
}

module attributes {stable_mosaic.version = 11 : i64} {
  func.func @attn_block_kernel(%arg0: i32, %arg1: i32, %arg2: memref<1x64x32xf32, #tpu.memory_space<vmem>>, %arg3: memref<32x16xf32, #tpu.memory_space<vmem>>, %arg4: memref<8x32xf32, #tpu.memory_space<vmem>>, %arg5: memref<32x96xbf16, #tpu.memory_space<vmem>>, %arg6: memref<1x96xf32, #tpu.memory_space<vmem>>, %arg7: memref<32x32xbf16, #tpu.memory_space<vmem>>, %arg8: memref<1x16x32xf32, #tpu.memory_space<vmem>>, %arg9: memref<64x32xbf16, #tpu.memory_space<vmem>>, %arg10: memref<64x32xbf16, #tpu.memory_space<vmem>>, %arg11: memref<64x32xbf16, #tpu.memory_space<vmem>>) attributes {dimension_semantics = [#tpu.dimension_semantics<parallel>, #tpu.dimension_semantics<arbitrary>], iteration_bounds = array<i64: 2, 4>, scalar_prefetch = 0 : i64, scratch_operands = 3 : i64, tpu.core_type = #tpu.core_type<tc>, window_params = [{transform_indices = @transform_0, window_bounds = array<i64: 1, 64, 32>}, {pipeline_mode = #tpu.pipeline_mode<synchronous>, transform_indices = @transform_1, window_bounds = array<i64: 32, 16>}, {pipeline_mode = #tpu.pipeline_mode<synchronous>, transform_indices = @transform_2, window_bounds = array<i64: 8, 32>}, {pipeline_mode = #tpu.pipeline_mode<synchronous>, transform_indices = @transform_3, window_bounds = array<i64: 32, 96>}, {pipeline_mode = #tpu.pipeline_mode<synchronous>, transform_indices = @transform_4, window_bounds = array<i64: 1, 96>}, {pipeline_mode = #tpu.pipeline_mode<synchronous>, transform_indices = @transform_5, window_bounds = array<i64: 32, 32>}, {transform_indices = @transform_6, window_bounds = array<i64: 1, 16, 32>}]} {
    %c0_i32 = arith.constant 0 : i32
    %0 = arith.cmpi eq, %arg1, %c0_i32 : i32
    %1 = arith.extui %0 : i1 to i32
    %c0_i32_0 = arith.constant 0 : i32
    %2 = arith.cmpi ne, %1, %c0_i32_0 : i32
    scf.if %2 {
      %cst_17 = arith.constant 0.000000e+00 : f32
      %35 = vector.broadcast %cst_17 : f32 to vector<1x32xf32>
      %c0_i32_18 = arith.constant 0 : i32
      %c64_i32 = arith.constant 64 : i32
      %36 = arith.muli %c0_i32_18, %c64_i32 : i32
      %37 = tpu.assume_multiple %36, 64 : i32
      %c0_19 = arith.constant 0 : index
      %38 = arith.index_cast %37 : i32 to index
      %c0_20 = arith.constant 0 : index
      %39 = vector.load %arg2[%c0_19, %38, %c0_20] : memref<1x64x32xf32, #tpu.memory_space<vmem>>, vector<1x64x32xf32>
      %40 = vector.shape_cast %39 : vector<1x64x32xf32> to vector<64x32xf32>
      %cst_21 = arith.constant dense<0.000000e+00> : vector<32xf32>
      %41 = vector.multi_reduction <add>, %40, %cst_21 [0] : vector<64x32xf32> to vector<32xf32>
      %42 = vector.shape_cast %41 : vector<32xf32> to vector<1x32xf32>
      %43 = arith.addf %35, %42 : vector<1x32xf32>
      %c1_i32 = arith.constant 1 : i32
      %c0_22 = arith.constant 0 : index
      %c0_23 = arith.constant 0 : index
      %44 = vector.load %arg3[%c0_22, %c0_23] : memref<32x16xf32, #tpu.memory_space<vmem>>, vector<32x16xf32>
      %cst_24 = arith.constant dense<0.000000e+00> : vector<1x16xf32>
      %45 = tpu.matmul %43, %44, %cst_24 {dimension_numbers = #tpu.dot_dimension_numbers<[1], [0], [0], [1], [0, 0, 1, 1], [], []>} : vector<1x32xf32>, vector<32x16xf32>, vector<1x16xf32> -> vector<1x16xf32>
      %cst_25 = arith.constant 7.812500e-03 : f32
      %46 = vector.broadcast %cst_25 : f32 to vector<1x16xf32>
      %47 = arith.mulf %45, %46 : vector<1x16xf32>
      %c0_26 = arith.constant 0 : index
      %c0_27 = arith.constant 0 : index
      %48 = vector.load %arg3[%c0_26, %c0_27] : memref<32x16xf32, #tpu.memory_space<vmem>>, vector<32x16xf32>
      %cst_28 = arith.constant dense<0.000000e+00> : vector<1x32xf32>
      %49 = tpu.matmul %47, %48, %cst_28 {dimension_numbers = #tpu.dot_dimension_numbers<[1], [1], [0], [0], [0, 0, 1, 0], [], []>} : vector<1x16xf32>, vector<32x16xf32>, vector<1x32xf32> -> vector<1x32xf32>
      %cst_29 = arith.constant 0.000000e+00 : f32
      %50 = vector.broadcast %cst_29 : f32 to vector<1x32xf32>
      %c0_i32_30 = arith.constant 0 : i32
      %c64_i32_31 = arith.constant 64 : i32
      %51 = arith.muli %c0_i32_30, %c64_i32_31 : i32
      %52 = tpu.assume_multiple %51, 64 : i32
      %c0_32 = arith.constant 0 : index
      %53 = arith.index_cast %52 : i32 to index
      %c0_33 = arith.constant 0 : index
      %54 = vector.load %arg2[%c0_32, %53, %c0_33] : memref<1x64x32xf32, #tpu.memory_space<vmem>>, vector<1x64x32xf32>
      %55 = vector.shape_cast %54 : vector<1x64x32xf32> to vector<64x32xf32>
      %56 = vector.broadcast %49 : vector<1x32xf32> to vector<64x32xf32>
      %57 = arith.subf %55, %56 : vector<64x32xf32>
      %58 = arith.mulf %57, %57 : vector<64x32xf32>
      %cst_34 = arith.constant dense<0.000000e+00> : vector<32xf32>
      %59 = vector.multi_reduction <add>, %58, %cst_34 [0] : vector<64x32xf32> to vector<32xf32>
      %60 = vector.shape_cast %59 : vector<32xf32> to vector<1x32xf32>
      %61 = arith.addf %50, %60 : vector<1x32xf32>
      %c1_i32_35 = arith.constant 1 : i32
      %c0_36 = arith.constant 0 : index
      %c0_37 = arith.constant 0 : index
      %62 = vector.load %arg3[%c0_36, %c0_37] : memref<32x16xf32, #tpu.memory_space<vmem>>, vector<32x16xf32>
      %cst_38 = arith.constant dense<0.000000e+00> : vector<1x16xf32>
      %63 = tpu.matmul %61, %62, %cst_38 {dimension_numbers = #tpu.dot_dimension_numbers<[1], [0], [0], [1], [0, 0, 1, 1], [], []>} : vector<1x32xf32>, vector<32x16xf32>, vector<1x16xf32> -> vector<1x16xf32>
      %cst_39 = arith.constant 7.812500e-03 : f32
      %64 = vector.broadcast %cst_39 : f32 to vector<1x16xf32>
      %65 = arith.mulf %63, %64 : vector<1x16xf32>
      %cst_40 = arith.constant 9.99999997E-7 : f32
      %66 = vector.broadcast %cst_40 : f32 to vector<1x16xf32>
      %67 = arith.addf %65, %66 : vector<1x16xf32>
      %68 = math.rsqrt %67 : vector<1x16xf32>
      %c0_41 = arith.constant 0 : index
      %c0_42 = arith.constant 0 : index
      %69 = vector.load %arg3[%c0_41, %c0_42] : memref<32x16xf32, #tpu.memory_space<vmem>>, vector<32x16xf32>
      %cst_43 = arith.constant dense<0.000000e+00> : vector<1x32xf32>
      %70 = tpu.matmul %68, %69, %cst_43 {dimension_numbers = #tpu.dot_dimension_numbers<[1], [1], [0], [0], [0, 0, 1, 0], [], []>} : vector<1x16xf32>, vector<32x16xf32>, vector<1x32xf32> -> vector<1x32xf32>
      %c0_44 = arith.constant 0 : index
      %c0_45 = arith.constant 0 : index
      %71 = vector.load %arg4[%c0_44, %c0_45] : memref<8x32xf32, #tpu.memory_space<vmem>>, vector<1x32xf32>
      %c1 = arith.constant 1 : index
      %c0_46 = arith.constant 0 : index
      %72 = vector.load %arg4[%c1, %c0_46] : memref<8x32xf32, #tpu.memory_space<vmem>>, vector<1x32xf32>
      %73 = arith.mulf %70, %71 : vector<1x32xf32>
      %74 = arith.mulf %49, %73 : vector<1x32xf32>
      %75 = arith.subf %72, %74 : vector<1x32xf32>
      %c0_i32_47 = arith.constant 0 : i32
      %c1_i32_48 = arith.constant 1 : i32
      %76 = arith.muli %c0_i32_47, %c1_i32_48 : i32
      %c0_i32_49 = arith.constant 0 : i32
      %77 = arith.addi %c0_i32_49, %76 : i32
      %c64_i32_50 = arith.constant 64 : i32
      %78 = arith.muli %77, %c64_i32_50 : i32
      %79 = tpu.assume_multiple %78, 64 : i32
      %c64_i32_51 = arith.constant 64 : i32
      %80 = arith.muli %77, %c64_i32_51 : i32
      %81 = tpu.assume_multiple %80, 64 : i32
      %c0_52 = arith.constant 0 : index
      %82 = arith.index_cast %81 : i32 to index
      %c0_53 = arith.constant 0 : index
      %83 = vector.load %arg2[%c0_52, %82, %c0_53] : memref<1x64x32xf32, #tpu.memory_space<vmem>>, vector<1x64x32xf32>
      %84 = vector.shape_cast %83 : vector<1x64x32xf32> to vector<64x32xf32>
      %85 = vector.broadcast %73 : vector<1x32xf32> to vector<64x32xf32>
      %86 = arith.mulf %84, %85 : vector<64x32xf32>
      %87 = vector.broadcast %75 : vector<1x32xf32> to vector<64x32xf32>
      %88 = arith.addf %86, %87 : vector<64x32xf32>
      %89 = arith.truncf %88 : vector<64x32xf32> to vector<64x32xbf16>
      %c0_54 = arith.constant 0 : index
      %c0_55 = arith.constant 0 : index
      %90 = vector.load %arg5[%c0_54, %c0_55] : memref<32x96xbf16, #tpu.memory_space<vmem>>, vector<32x96xbf16>
      %cst_56 = arith.constant dense<0.000000e+00> : vector<64x96xf32>
      %91 = tpu.matmul %89, %90, %cst_56 {dimension_numbers = #tpu.dot_dimension_numbers<[1], [0], [0], [1], [0, 0, 1, 1], [], []>} : vector<64x32xbf16>, vector<32x96xbf16>, vector<64x96xf32> -> vector<64x96xf32>
      %c0_57 = arith.constant 0 : index
      %c0_58 = arith.constant 0 : index
      %92 = vector.load %arg6[%c0_57, %c0_58] : memref<1x96xf32, #tpu.memory_space<vmem>>, vector<1x96xf32>
      %93 = vector.broadcast %92 : vector<1x96xf32> to vector<64x96xf32>
      %94 = arith.addf %91, %93 : vector<64x96xf32>
      %95 = vector.extract_strided_slice %94 {offsets = [0, 0], sizes = [64, 32], strides = [1, 1]} : vector<64x96xf32> to vector<64x32xf32>
      %96 = arith.truncf %95 : vector<64x32xf32> to vector<64x32xbf16>
      %97 = arith.index_cast %79 : i32 to index
      %c0_59 = arith.constant 0 : index
      %98 = vector.load %arg9[%97, %c0_59] : memref<64x32xbf16, #tpu.memory_space<vmem>>, vector<64x32xbf16>
      tpu.vector_store %arg9[%97, %c0_59], %96 {strides = array<i32>} : memref<64x32xbf16, #tpu.memory_space<vmem>>, vector<64x32xbf16>,
      %99 = vector.extract_strided_slice %94 {offsets = [0, 32], sizes = [64, 32], strides = [1, 1]} : vector<64x96xf32> to vector<64x32xf32>
      %100 = arith.truncf %99 : vector<64x32xf32> to vector<64x32xbf16>
      %101 = arith.index_cast %79 : i32 to index
      %c0_60 = arith.constant 0 : index
      %102 = vector.load %arg10[%101, %c0_60] : memref<64x32xbf16, #tpu.memory_space<vmem>>, vector<64x32xbf16>
      tpu.vector_store %arg10[%101, %c0_60], %100 {strides = array<i32>} : memref<64x32xbf16, #tpu.memory_space<vmem>>, vector<64x32xbf16>,
      %103 = vector.extract_strided_slice %94 {offsets = [0, 64], sizes = [64, 32], strides = [1, 1]} : vector<64x96xf32> to vector<64x32xf32>
      %104 = arith.truncf %103 : vector<64x32xf32> to vector<64x32xbf16>
      %105 = arith.index_cast %79 : i32 to index
      %c0_61 = arith.constant 0 : index
      %106 = vector.load %arg11[%105, %c0_61] : memref<64x32xbf16, #tpu.memory_space<vmem>>, vector<64x32xbf16>
      tpu.vector_store %arg11[%105, %c0_61], %104 {strides = array<i32>} : memref<64x32xbf16, #tpu.memory_space<vmem>>, vector<64x32xbf16>,
      %c1_i32_62 = arith.constant 1 : i32
    } else {
    }
    %c16_i32 = arith.constant 16 : i32
    %3 = arith.muli %arg1, %c16_i32 : i32
    %4 = tpu.assume_multiple %3, 16 : i32
    %c0 = arith.constant 0 : index
    %5 = arith.index_cast %4 : i32 to index
    %c0_1 = arith.constant 0 : index
    %6 = vector.load %arg2[%c0, %5, %c0_1] : memref<1x64x32xf32, #tpu.memory_space<vmem>>, vector<1x16x32xf32>
    %7 = vector.shape_cast %6 : vector<1x16x32xf32> to vector<16x32xf32>
    %8 = arith.index_cast %4 : i32 to index
    %c0_2 = arith.constant 0 : index
    %9 = vector.load %arg9[%8, %c0_2] : memref<64x32xbf16, #tpu.memory_space<vmem>>, vector<16x32xbf16>
    %c0_3 = arith.constant 0 : index
    %c0_4 = arith.constant 0 : index
    %10 = vector.load %arg10[%c0_3, %c0_4] : memref<64x32xbf16, #tpu.memory_space<vmem>>, vector<64x32xbf16>
    %cst = arith.constant dense<0.000000e+00> : vector<16x64xf32>
    %11 = tpu.matmul %9, %10, %cst {dimension_numbers = #tpu.dot_dimension_numbers<[1], [1], [0], [0], [0, 0, 1, 0], [], []>} : vector<16x32xbf16>, vector<64x32xbf16>, vector<16x64xf32> -> vector<16x64xf32>
    %cst_5 = arith.constant dense<0xFF800000> : vector<16xf32>
    %12 = vector.multi_reduction <maximumf>, %11, %cst_5 [1] : vector<16x64xf32> to vector<16xf32>
    %13 = vector.shape_cast %12 : vector<16xf32> to vector<16x1xf32>
    %14 = vector.broadcast %13 : vector<16x1xf32> to vector<16x64xf32>
    %15 = arith.subf %11, %14 : vector<16x64xf32>
    %16 = math.exp %15 : vector<16x64xf32>
    %cst_6 = arith.constant dense<0.000000e+00> : vector<16xf32>
    %17 = vector.multi_reduction <add>, %16, %cst_6 [1] : vector<16x64xf32> to vector<16xf32>
    %18 = vector.shape_cast %17 : vector<16xf32> to vector<16x1xf32>
    %19 = arith.truncf %16 : vector<16x64xf32> to vector<16x64xbf16>
    %c0_7 = arith.constant 0 : index
    %c0_8 = arith.constant 0 : index
    %20 = vector.load %arg11[%c0_7, %c0_8] : memref<64x32xbf16, #tpu.memory_space<vmem>>, vector<64x32xbf16>
    %cst_9 = arith.constant dense<0.000000e+00> : vector<16x32xf32>
    %21 = tpu.matmul %19, %20, %cst_9 {dimension_numbers = #tpu.dot_dimension_numbers<[1], [0], [0], [1], [0, 0, 1, 1], [], []>} : vector<16x64xbf16>, vector<64x32xbf16>, vector<16x32xf32> -> vector<16x32xf32>
    %22 = tpu.reciprocal %18 {approx = true} : vector<16x1xf32> -> vector<16x1xf32>
    %23 = vector.broadcast %22 : vector<16x1xf32> to vector<16x32xf32>
    %24 = arith.mulf %21, %23 : vector<16x32xf32>
    %25 = arith.truncf %24 : vector<16x32xf32> to vector<16x32xbf16>
    %c0_10 = arith.constant 0 : index
    %c0_11 = arith.constant 0 : index
    %26 = vector.load %arg7[%c0_10, %c0_11] : memref<32x32xbf16, #tpu.memory_space<vmem>>, vector<32x32xbf16>
    %cst_12 = arith.constant dense<0.000000e+00> : vector<16x32xf32>
    %27 = tpu.matmul %25, %26, %cst_12 {dimension_numbers = #tpu.dot_dimension_numbers<[1], [0], [0], [1], [0, 0, 1, 1], [], []>} : vector<16x32xbf16>, vector<32x32xbf16>, vector<16x32xf32> -> vector<16x32xf32>
    %c2 = arith.constant 2 : index
    %c0_13 = arith.constant 0 : index
    %28 = vector.load %arg4[%c2, %c0_13] : memref<8x32xf32, #tpu.memory_space<vmem>>, vector<1x32xf32>
    %29 = vector.broadcast %28 : vector<1x32xf32> to vector<16x32xf32>
    %30 = arith.addf %27, %29 : vector<16x32xf32>
    %31 = arith.addf %7, %30 : vector<16x32xf32>
    %c0_14 = arith.constant 0 : index
    %c0_15 = arith.constant 0 : index
    %c0_16 = arith.constant 0 : index
    %32 = vector.load %arg8[%c0_14, %c0_15, %c0_16] : memref<1x16x32xf32, #tpu.memory_space<vmem>>, vector<1x16x32xf32>
    %33 = vector.shape_cast %32 : vector<1x16x32xf32> to vector<16x32xf32>
    %34 = vector.shape_cast %31 : vector<16x32xf32> to vector<1x16x32xf32>
    tpu.vector_store %arg8[%c0_14, %c0_15, %c0_16], %34 {strides = array<i32>} : memref<1x16x32xf32, #tpu.memory_space<vmem>>, vector<1x16x32xf32>,
    return
  }
  func.func @transform_0(%arg0: i32, %arg1: i32) -> (i32, i32, i32) {
    %c0_i32 = arith.constant 0 : i32
    %c0_i32_0 = arith.constant 0 : i32
    %c0_i32_1 = arith.constant 0 : i32
    return %arg0, %c0_i32, %c0_i32_0 : i32, i32, i32
  }
  func.func @transform_1(%arg0: i32, %arg1: i32) -> (i32, i32) {
    %c0_i32 = arith.constant 0 : i32
    %c0_i32_0 = arith.constant 0 : i32
    %c0_i32_1 = arith.constant 0 : i32
    return %c0_i32, %c0_i32_0 : i32, i32
  }
  func.func @transform_2(%arg0: i32, %arg1: i32) -> (i32, i32) {
    %c0_i32 = arith.constant 0 : i32
    %c0_i32_0 = arith.constant 0 : i32
    %c0_i32_1 = arith.constant 0 : i32
    return %c0_i32, %c0_i32_0 : i32, i32
  }
  func.func @transform_3(%arg0: i32, %arg1: i32) -> (i32, i32) {
    %c0_i32 = arith.constant 0 : i32
    %c0_i32_0 = arith.constant 0 : i32
    %c0_i32_1 = arith.constant 0 : i32
    return %c0_i32, %c0_i32_0 : i32, i32
  }
  func.func @transform_4(%arg0: i32, %arg1: i32) -> (i32, i32) {
    %c0_i32 = arith.constant 0 : i32
    %c0_i32_0 = arith.constant 0 : i32
    %c0_i32_1 = arith.constant 0 : i32
    return %c0_i32, %c0_i32_0 : i32, i32
  }
  func.func @transform_5(%arg0: i32, %arg1: i32) -> (i32, i32) {
    %c0_i32 = arith.constant 0 : i32
    %c0_i32_0 = arith.constant 0 : i32
    %c0_i32_1 = arith.constant 0 : i32
    return %c0_i32, %c0_i32_0 : i32, i32
  }
  func.func @transform_6(%arg0: i32, %arg1: i32) -> (i32, i32, i32) {
    %c0_i32 = arith.constant 0 : i32
    %c0_i32_0 = arith.constant 0 : i32
    return %arg0, %arg1, %c0_i32 : i32, i32, i32
  }
}

</mosaic_0001>

<bundles_post_ra>
// kernel: tpu_custom_call.1
= control target key start
LH: loop header
LB: loop body
LE: loop exit
PB: predicated region body
PF: predicated region fallthrough
CT: control target
= control target key end

     0   :  { %s1484_s21 = smov 0   ;;  %s1486_s22 = smov 0   ;;  %s1751_s0 = inlined_call_operand.vmem [shape: f32[2,64,32], index: 0, kind: input, shape index: {}]   ;;  %s1752_s1 = inlined_call_operand.vmem [shape: f32[32,16], index: 1, kind: input, shape index: {}]   ;;  %s1753_s2 = inlined_call_operand.vmem [shape: f32[8,32], index: 2, kind: input, shape index: {}]   ;;  %s1754_s3 = inlined_call_operand.vmem [shape: bf16[32,96], index: 3, kind: input, shape index: {}]   ;;  %s1755_s4 = inlined_call_operand.vmem [shape: f32[1,96], index: 4, kind: input, shape index: {}]   ;;  %s1756_s5 = inlined_call_operand.vmem [shape: bf16[32,32], index: 5, kind: input, shape index: {}]   ;;  %s1757_s6 = inlined_call_operand.vmem [shape: f32[2,64,32], index: 6, kind: output, shape index: {}]  }
   0x1   :  { %s1488_s23 = smov 0   ;;  %s1490_s24 = smov 0  }
   0x2   :  { %s1492_s25 = smov 0  }
   0x3 LB: > { %s25_s26 = sadd.s32 1, %s1432_s23  ;;  %s28_s27 = sadd.s32 1, %s1436_s24  ;;  %s1440_s25 = sphi %s1492_s25, %s16_s25   ;;  %s1436_s24 = sphi %s1490_s24, %s1763_s24   ;;  %s1432_s23 = sphi %s1488_s23, %s1762_s23   ;;  %s1428_s22 = sphi %s1486_s22, %s1761_s22   ;;  %s1424_s21 = sphi %s1484_s21, %s1760_s21  }
   0x4   : > { %p26_p0 = scmp.ge.s32.totalorder %s25_s26, 4  ;;  %p1149_p1 = scmp.ge.s32.totalorder %s1440_s25, 1 }
   0x5   : > { %p226_p2 = scmp.lt.s32.totalorder %s1440_s25, 9 }
   0x6   : > { %s1765_s26 = smov (%p26_p0, %s25_s26), 0  ;;  %s1767_s27 = smov (!%p26_p0, %s28_s27), %s1436_s24 }
   0x7   : > { %p227_p3 = pnand %p1149_p1, %p226_p2  ;;  %p30_p4 = scmp.ge.s32.totalorder %s1767_s27, 2 }
   0x8   : > { %p260_p5 = scmp.lt.s32.totalorder (!%p227_p3), %s1428_s22, 1  ;;  %s1152_s28 = sshll.u32 (!%p227_p3), %s1424_s21, 1 }
   0x9   : > { %s1769_s27 = smov (%p30_p4, %s1767_s27), 0  ;;  %230 = sbr.rel (%p227_p3) target bundleno = 2154 (0x86a), region = 44 }
   0xa   : > { %p268_p6 = scmp.lt.s32.totalorder (!%p227_p3), %s1152_s28, 7  ;;  %p1155_p7 = scmp.ne.s32.totalorder (!%p227_p3), %s1424_s21, 0 }
  0x10   : > { %s1771_s22 = smov (!%p260_p5, %s1428_s22), 1  ;;  %s1773_s28 = smov (!%p268_p6, %s1152_s28), 7 }
  0x11   : > { %s1185_s29 = sshll.u32 %s1771_s22, 6  ;;  %s1153_s30 = sshll.u32 %s1771_s22, 3  ;;  %v311_v0 = vld [vmem:[%s1752_s1] sm:$0xff] (!%p1155_p7)  ;;  %v312_v1 = vld [vmem:[%s1752_s1 + $0x8] sm:$0xff] (!%p1155_p7)  ;;  %v313_v2 = vld [vmem:[%s1752_s1 + $0x10] sm:$0xff] (!%p1155_p7)  ;;  %v1442_v3 = vmov (!%p1155_p7), 0.0|0.0   ;;  %v475_v41 = vlaneseq (!%p1155_p7) }
  0x12   : > { %s1520_s9 = scalar_lea.vmem %s1751_s0, %s1185_s29  ;;  %s271_s10 = sadd.s32 %s1153_s30, %s1773_s28  ;;  %1313 = vmatprep.subr.bf16.mxu0 (!%p1155_p7), %v1442_v3  ;;  %v1538_v4 = vpack.c.bf16 (!%p1155_p7), %v312_v1, %v311_v0  ;;  %v314_v5 = vld [vmem:[%s1752_s1 + $0x18] sm:$0xff] (!%p1155_p7)  ;;  %vm1443_vm0 = vmmov (!%p1155_p7), 0   ;;  %v1444_v6 = vmov (!%p1155_p7), 0.0   ;;  %vm288_vm1 = vcmask (!%p1155_p7), 261120   ;;  %1319 = vmatprep.subr.bf16.mxu1 (!%p1155_p7), %v1442_v3 }
  0x13   : > { %s1154_s11 = sshll.u32 %s271_s10, 3  ;;  %279 = sbr.rel (%p1155_p7) target bundleno = 1308 (0x51c), region = 48  ;;  %1233 = vmatprep.mubr.msk.f32.mxu0 (!%p1155_p7), %vm1443_vm0, %v1444_v6  ;;  %v1546_v7 = vld [vmem:[%s1520_s9] sm:$0xff] (!%p1155_p7)  ;;  %v1549_v8 = vld [vmem:[%s1520_s9 + $0x8] sm:$0xff] (!%p1155_p7)  ;;  %vm389_vm2 = vcmask (!%p1155_p7), 130048   ;;  %v1552_v9 = vld [vmem:[%s1520_s9 + $0x10] sm:$0xff] (!%p1155_p7)  ;;  %1244 = vmatprep.mubr.msk.f32.mxu1 (!%p1155_p7), %vm1443_vm0, %v1444_v6  ;;  %v1565_v13 = vpack.c.bf16 (!%p1155_p7), %v314_v5, %v313_v2 }
  0x14   : > { %s1525_s14 = scalar_lea.vmem %s1757_s6, %s1154_s11  ;;  %v1555_v10 = vld [vmem:[%s1520_s9 + $0x18] sm:$0xff] (!%p1155_p7)  ;;  %v289_v11 = vsel (!%p1155_p7), %vm288_vm1, %v1546_v7, 0.0  ;;  %v290_v12 = vsel (!%p1155_p7), %vm288_vm1, %v1549_v8, 0.0  ;;  %1315 = vmatpush3.bf16.msra.mxu0 (!%p1155_p7), %v1538_v4  ;;  %v1568_v14 = vld [vmem:[%s1520_s9 + $0x20] sm:$0xff] (!%p1155_p7)  ;;  %v292_v16 = vsel (!%p1155_p7), %vm288_vm1, %v1552_v9, 0.0  ;;  %v1574_v17 = vld [vmem:[%s1520_s9 + $0x28] sm:$0xff] (!%p1155_p7) }
  0x15   : > { %v291_v15 = vadd.f32 (!%p1155_p7), %v290_v12, %v289_v11  ;;  %1316 = vmatprep.subr.bf16.mxu0 (!%p1155_p7), %v1442_v3  ;;  %v294_v18 = vsel (!%p1155_p7), %vm288_vm1, %v1555_v10, 0.0  ;;  %vm1580_vm3 = vmpackc.low (!%p1155_p7), %vm389_vm2, %vm389_vm2  ;;  %v296_v21 = vsel (!%p1155_p7), %vm288_vm1, %v1568_v14, 0.0  ;;  %v1592_v22 = vld [vmem:[%s1520_s9 + $0x30] sm:$0xff] (!%p1155_p7)  ;;  %v298_v24 = vsel (!%p1155_p7), %vm288_vm1, %v1574_v17, 0.0  ;;  %v1598_v25 = vld [vmem:[%s1520_s9 + $0x38] sm:$0xff] (!%p1155_p7)  ;;  %s1445_s17 = smov (!%p1155_p7), 64  }
  0x16   : > { %1322 = vmatpush3.bf16.xpose.msk.msra.mxu1 (!%p1155_p7), %vm1580_vm3, %v1538_v4  ;;  %v300_v27 = vsel (!%p1155_p7), %vm288_vm1, %v1592_v22, 0.0  ;;  %v302_v29 = vsel (!%p1155_p7), %vm288_vm1, %v1598_v25, 0.0  ;;  %v476_v42 = vshrl.u32 (!%p1155_p7), %v475_v41, 7  ;;  %s1446_s18 = smov (!%p1155_p7), 96  }
  0x17   : > { %v293_v20 = vadd.f32 (!%p1155_p7), %v292_v16, %v291_v15  ;;  %1323 = vmatprep.subr.bf16.mxu1 (!%p1155_p7), %v1442_v3 }
  0x18   : > { %1318 = vmatpush3.bf16.msra.mxu0 (!%p1155_p7), %v1565_v13  ;;  %v1615_v43 = vsub.s32 (!%p1155_p7), 0, %v476_v42 }
  0x19   : > { %v295_v23 = vadd.f32 (!%p1155_p7), %v294_v18, %v293_v20  ;;  %1327 = vmatprep.subr.bf16.mxu0 (!%p1155_p7), %v1442_v3 }
  0x1b   : > { %v297_v26 = vadd.f32 %v296_v21, %v295_v23 }
  0x1d   : > { %v299_v28 = vadd.f32 %v298_v24, %v297_v26 }
  0x1e   : > { %1326 = vmatpush3.bf16.xpose.msk.msra.mxu1 %vm1580_vm3, %v1565_v13 }
  0x1f   : > { %v301_v30 = vadd.f32 %v300_v27, %v299_v28 }
  0x21   : > { %v303_v31 = vadd.f32 %v302_v29, %v301_v30 }
  0x23   : > { %v304_v32 = vrot.slane %v303_v31, 4 }
  0x25   : > { %v305_v33 = vadd.f32 %v304_v32, %v303_v31 }
  0x27   : > { %v306_v34 = vrot.slane %v305_v33, 2 }
  0x29   : > { %v307_v35 = vadd.f32 %v306_v34, %v305_v33 }
  0x2b   : > { %v308_v36 = vrot.slane %v307_v35, 1 }
  0x2d   : > { %v309_v37 = vadd.f32 %v308_v36, %v307_v35 }
  0x2f   : > { %1234 = vmatmul.mubr.msk.f32.vlgmr.msra.gmra.mrb[0].mxu0 %vm288_vm1, %v309_v37 }
  0x30   : > { %1329 = vmatpush3.bf16.msra.mxu0 %v1538_v4  ;;  %1255 = vmatprep.mubr.msk.f32.mxu0 %vm1443_vm0, %v1444_v6 }
  0x31   : > { %1330 = vmatprep.subr.bf16.mxu0 %v1442_v3 }
  0x34   : > { %1332 = vmatpush3.bf16.msra.mxu0 %v1565_v13 }
  0x35   : > { %1333 = vmatprep.subr.bf16.mxu0 %v1442_v3 }
 0x102   : > { %v384_v38 = vpop.f32.mrb[0].mxu0 }
 0x103   : > { %v388_v39 = vmul.f32 0.0078125, %v384_v38  ;;  %v1235_v40 = vpop.f32.mrb[1].mxu0 }
 0x105   : > { %1245 = vmatmul.mubr.msk.f32.vlgmr.msra.gmra.mrb[0].mxu1 %vm389_vm2, %v388_v39  ;;  %v667_v39 = vld [vmem:[%s1753_s2 + $0x1] sm:$0x1] }
 0x1d8   : > { %v1617_v44 = vpop.f32.mrb[0].mxu1 }
 0x1d9   : > { %v478_v45 = vrot.slane %v1617_v44, %v1615_v43  ;;  %v1246_v46 = vpop.f32.mrb[1].mxu1 }
 0x1db   : > { %v479_v47 = vsub.f32 %v1546_v7, %v478_v45  ;;  %v480_v48 = vsub.f32 %v1549_v8, %v478_v45  ;;  %v481_v49 = vsub.f32 %v1552_v9, %v478_v45  ;;  %v482_v50 = vsub.f32 %v1555_v10, %v478_v45 }
 0x1dc   : > { %v483_v51 = vsub.f32 %v1568_v14, %v478_v45  ;;  %v484_v55 = vsub.f32 %v1574_v17, %v478_v45  ;;  %v485_v60 = vsub.f32 %v1592_v22, %v478_v45  ;;  %v486_v0 = vsub.f32 %v1598_v25, %v478_v45 }
 0x1dd   : > { %v487_v52 = vmul.f32 %v479_v47, %v479_v47  ;;  %v488_v53 = vmul.f32 %v480_v48, %v480_v48  ;;  %v489_v54 = vmul.f32 %v481_v49, %v481_v49  ;;  %v490_v56 = vmul.f32 %v482_v50, %v482_v50 }
 0x1de   : > { %v491_v61 = vmul.f32 %v483_v51, %v483_v51  ;;  %v492_v1 = vmul.f32 %v484_v55, %v484_v55  ;;  %v493_v11 = vmul.f32 %v485_v60, %v485_v60  ;;  %v494_v16 = vmul.f32 %v486_v0, %v486_v0 }
 0x1df   : > { %v495_v57 = vsel %vm288_vm1, %v487_v52, 0.0  ;;  %v496_v58 = vsel %vm288_vm1, %v488_v53, 0.0  ;;  %v498_v62 = vsel %vm288_vm1, %v489_v54, 0.0  ;;  %v500_v2 = vsel %vm288_vm1, %v490_v56, 0.0 }
 0x1e0   : > { %v497_v59 = vadd.f32 %v496_v58, %v495_v57  ;;  %v502_v12 = vsel %vm288_vm1, %v491_v61, 0.0  ;;  %v504_v18 = vsel %vm288_vm1, %v492_v1, 0.0  ;;  %v506_v21 = vsel %vm288_vm1, %v493_v11, 0.0 }
 0x1e1   : > { %v508_v24 = vsel %vm288_vm1, %v494_v16, 0.0 }
 0x1e2   : > { %v499_v63 = vadd.f32 %v498_v62, %v497_v59 }
 0x1e4   : > { %v501_v5 = vadd.f32 %v500_v2, %v499_v63 }
 0x1e6   : > { %v503_v15 = vadd.f32 %v502_v12, %v501_v5 }
 0x1e8   : > { %v505_v20 = vadd.f32 %v504_v18, %v503_v15 }
 0x1ea   : > { %v507_v23 = vadd.f32 %v506_v21, %v505_v20 }
 0x1ec   : > { %v509_v26 = vadd.f32 %v508_v24, %v507_v23 }
 0x1ee   : > { %v510_v27 = vrot.slane %v509_v26, 4 }
 0x1f0   : > { %v511_v28 = vadd.f32 %v510_v27, %v509_v26 }
 0x1f2   : > { %v512_v29 = vrot.slane %v511_v28, 2 }
 0x1f4   : > { %v513_v30 = vadd.f32 %v512_v29, %v511_v28 }
 0x1f6   : > { %v514_v31 = vrot.slane %v513_v30, 1 }
 0x1f8   : > { %v515_v32 = vadd.f32 %v514_v31, %v513_v30 }
 0x1fa   : > { %1256 = vmatmul.mubr.msk.f32.vlgmr.msra.gmra.mrb[2].mxu0 %vm288_vm1, %v515_v32 }
 0x1fb   : > { %1336 = vmatpush3.bf16.xpose.msk.msra.mxu0 %vm1580_vm3, %v1538_v4  ;;  %1266 = vmatprep.mubr.msk.f32.mxu0 %vm1443_vm0, %v1444_v6  ;;  %v1388_v4 = vld [vmem:[%s1754_s3] sm:$0xff]  }
 0x1fc   : > { %1337 = vmatprep.subr.bf16.mxu0 %v1442_v3  ;;  %v1389_v3 = vld [vmem:[%s1754_s3 + $0x8] sm:$0xff]   ;;  %1269 = vmatprep.subr.bf16.mxu1 %v1388_v4  ;;  %v666_v6 = vld [vmem:[%s1753_s2] sm:$0x1] }
 0x1fd   : > { %1270 = vmatpush3.bf16.msra.mxu1 %v1388_v4 }
 0x1fe   : > { %1271 = vmatprep.subr.bf16.mxu1 %v1389_v3 }
 0x201   : > { %1272 = vmatpush3.bf16.msra.mxu1 %v1389_v3 }
 0x203   : > { %1340 = vmatpush3.bf16.xpose.msk.msra.mxu0 %vm1580_vm3, %v1565_v13 }
 0x2cd   : > { %v586_v33 = vpop.f32.mrb[2].mxu0 }
 0x2ce   : > { %v590_v34 = vmul.f32 0.0078125, %v586_v33  ;;  %v1257_v35 = vpop.f32.mrb[3].mxu0 }
 0x2d0   : > { %v591_v36 = vadd.f32 1e-06, %v590_v34 }
 0x2d2   : > { %1390 = vrsqrt.f32 %v591_v36 }
 0x2dc   : > { %v1391_v37 = vpop.eup %1390 }
 0x2dd   : > { %1267 = vmatmul.mubr.msk.f32.vlgmr.msra.gmra.mrb[4].mxu0 %vm389_vm2, %v1391_v37 }
 0x3b0   : > { %v662_v13 = vpop.f32.mrb[4].mxu0 }
 0x3b1   : > { %v668_v19 = vmul.f32 %v666_v6, %v662_v13  ;;  %v1268_v38 = vpop.f32.mrb[5].mxu0 }
 0x3b3   : > { %v669_v40 = vmul.f32 %v668_v19, %v1617_v44  ;;  %v674_v41 = vrot.slane %v668_v19, %v1615_v43 }
 0x3b5   : > { %v670_v42 = vsub.f32 %v667_v39, %v669_v40  ;;  %v675_v45 = vmul.f32 %v674_v41, %v1546_v7  ;;  %v676_v47 = vmul.f32 %v674_v41, %v1549_v8  ;;  %v677_v48 = vmul.f32 %v674_v41, %v1552_v9 }
 0x3b6   : > { %v678_v49 = vmul.f32 %v674_v41, %v1555_v10  ;;  %v679_v50 = vmul.f32 %v674_v41, %v1568_v14  ;;  %v680_v51 = vmul.f32 %v674_v41, %v1574_v17  ;;  %v681_v52 = vmul.f32 %v674_v41, %v1592_v22  ;;  %v1168_v17 = vld [vmem:[%s1755_s4] ss:$0 sm:$0xff] }
 0x3b7   : > { %v686_v46 = vrot.slane %v670_v42, %v1615_v43  ;;  %v682_v44 = vmul.f32 %v674_v41, %v1598_v25 }
 0x3b9   : > { %v687_v53 = vadd.f32 %v686_v46, %v675_v45  ;;  %v688_v54 = vadd.f32 %v686_v46, %v676_v47  ;;  %v689_v55 = vadd.f32 %v686_v46, %v677_v48  ;;  %v690_v7 = vadd.f32 %v686_v46, %v678_v49 }
 0x3ba   : > { %v691_v56 = vadd.f32 %v686_v46, %v679_v50  ;;  %v692_v43 = vadd.f32 %v686_v46, %v680_v51  ;;  %v693_v57 = vadd.f32 %v686_v46, %v681_v52  ;;  %v694_v8 = vadd.f32 %v686_v46, %v682_v44 }
 0x3bb   : > { %v695_v58 = vpack.c.bf16 %v688_v54, %v687_v53  ;;  %v696_v9 = vpack.c.bf16 %v690_v7, %v689_v55 }
 0x3bc   : > { %v697_v59 = vpack.c.bf16 %v692_v43, %v691_v56  ;;  %v698_v10 = vpack.c.bf16 %v694_v8, %v693_v57 }
 0x3bd   : > { %1273 = vmatprep.mubr.msk.bf16.mxu1 %vm288_vm1, %v695_v58 }
 0x3be   : > { %1274 = vmatmul.mubr.msk.bf16.vlgmr.msra.gmra.mrb[4].mxu1 %vm288_vm1, %v696_v9 }
 0x3bf   : > { %1277 = vmatprep.mubr.msk.bf16.mxu1 %vm288_vm1, %v697_v59 }
 0x3c6   : > { %1278 = vmatmul.mubr.msk.bf16.gmra.mrb[8].mxu1 %vm288_vm1, %v698_v10 }
 0x491   : > { %v1275_v14 = vpop.f32.mrb[4].mxu1 }
 0x492   : > { %v768_v22 = vpop.f32.mrb[5].mxu1  ;;  %v777_v60 = vadd.f32 %v1275_v14, %v1168_v17 }
 0x493   : > { %v1276_v25 = vpop.f32.mrb[6].mxu1  ;;  %v769_v63 = vadd.f32 %v1168_v17, %v768_v22 }
 0x494   : > { %v780_v61 = vadd.f32 %v1276_v25, %v1168_v17  ;;  %v771_v62 = vpop.f32.mrb[7].mxu1 }
 0x495   : > { %v772_v0 = vadd.f32 %v1168_v17, %v771_v62 }
 0x496   : > { %v800_v1 = vpack.c.bf16 %v780_v61, %v777_v60 }
 0x497   : > { %v799_v2 = vpack.c.bf16 %v772_v0, %v769_v63 }
 0x498   : > { %804 = vst.msk [vmem:[#allocation2 + $0x8] sm:$0xff] %vm288_vm1, %v800_v1  ;;  %829 = vrot.lane.b32.xlu1 %v800_v1, %s1445_s17  ;;  %813 = vrot.lane.b32.xlu0 %v800_v1, %s1446_s18 }
 0x499   : > { %803 = vst.msk [vmem:[#allocation2] sm:$0xff] %vm288_vm1, %v799_v2  ;;  %v1279_v5 = vpop.f32.mrb[8].mxu1 }
 0x49a   : > { %v784_v11 = vpop.f32.mrb[9].mxu1  ;;  %v793_v15 = vadd.f32 %v1279_v5, %v1168_v17 }
 0x49b   : > { %v1280_v12 = vpop.f32.mrb[10].mxu1  ;;  %v785_v20 = vadd.f32 %v1168_v17, %v784_v11 }
 0x49c   : > { %v796_v16 = vadd.f32 %v1280_v12, %v1168_v17  ;;  %v787_v18 = vpop.f32.mrb[11].mxu1  ;;  %811 = vrot.lane.b32.xlu0 %v799_v2, %s1446_s18 }
 0x49d   : > { %v788_v21 = vadd.f32 %v1168_v17, %v787_v18 }
 0x49e   : > { %v802_v23 = vpack.c.bf16 %v796_v16, %v793_v15 }
 0x49f   : > { %v801_v24 = vpack.c.bf16 %v788_v21, %v785_v20 }
 0x4a0   : > { %806 = vst.msk [vmem:[#allocation2 + $0x18] sm:$0xff] %vm288_vm1, %v802_v23  ;;  %817 = vrot.lane.b32.xlu1 %v802_v23, %s1446_s18  ;;  %827 = vrot.lane.b32.xlu0 %v799_v2, %s1445_s17 }
 0x4a1   : > { %805 = vst.msk [vmem:[#allocation2 + $0x10] sm:$0xff] %vm288_vm1, %v801_v24 }
 0x4a4   : > { %815 = vrot.lane.b32.xlu1 %v801_v24, %s1446_s18  ;;  %831 = vrot.lane.b32.xlu0 %v801_v24, %s1445_s17 }
 0x4a8   : > { %833 = vrot.lane.b32.xlu1 %v802_v23, %s1445_s17 }
 0x50a   : > { %v830_v26 = vpop.permute.xlu1 %829  ;;  %v814_v27 = vpop.permute.xlu0 %813 }
 0x50b   : > { %840 = vst.msk [vmem:[#allocation4 + $0x8] sm:$0xff] %vm288_vm1, %v830_v26  ;;  %824 = vst.msk [vmem:[#allocation3 + $0x8] sm:$0xff] %vm288_vm1, %v814_v27 }
 0x50e   : > { %v812_v28 = vpop.permute.xlu0 %811 }
 0x50f   : > { %823 = vst.msk [vmem:[#allocation3] sm:$0xff] %vm288_vm1, %v812_v28 }
 0x512   : > { %v818_v29 = vpop.permute.xlu1 %817  ;;  %v828_v30 = vpop.permute.xlu0 %827 }
 0x513   : > { %826 = vst.msk [vmem:[#allocation3 + $0x18] sm:$0xff] %vm288_vm1, %v818_v29  ;;  %839 = vst.msk [vmem:[#allocation4] sm:$0xff] %vm288_vm1, %v828_v30 }
 0x516   : > { %v816_v31 = vpop.permute.xlu1 %815  ;;  %v832_v32 = vpop.permute.xlu0 %831 }
 0x517   : > { %825 = vst.msk [vmem:[#allocation3 + $0x10] sm:$0xff] %vm288_vm1, %v816_v31  ;;  %841 = vst.msk [vmem:[#allocation4 + $0x10] sm:$0xff] %vm288_vm1, %v832_v32 }
 0x51a   : > { %v834_v33 = vpop.permute.xlu1 %833 }
 0x51b   : > { %842 = vst.msk [vmem:[#allocation4 + $0x18] sm:$0xff] %vm288_vm1, %v834_v33 }
 0x51c PF: > { %v852_v34 = vld [vmem:[#allocation3] sm:$0xff]  ;;  %vm856_vm4 = vcmask 261120   ;;  %v1447_v35 = vmov 0.0   ;;  %vm1448_vm5 = vmmov 0   ;;  %v853_v37 = vld [vmem:[#allocation3 + $0x8] sm:$0xff]  ;;  %s1175_s19 = sshll.u32 %s1424_s21, 4 }
 0x51d   : > { %1281 = vmatprep.subr.bf16.mxu0 %v1447_v35  ;;  %v861_v36 = vsel %vm856_vm4, %v852_v34, 0  ;;  %1289 = vmatprep.mubr.msk.bf16.mxu0 %vm1448_vm5, %v1447_v35  ;;  %v864_v4 = vsel %vm856_vm4, %v853_v37, 0  ;;  %v855_v13 = vld [vmem:[#allocation3 + $0x18] sm:$0xff]  ;;  %s847_s20 = sshra.s32 %s1175_s19, 4  ;;  %vm913_vm6 = vcmask 523264   ;;  %v933_v47 = vld [vmem:[#allocation4] sm:$0xff]  ;;  %s844_s10 = scalar_lea.vmem %s1520_s9, %s1175_s19 }
 0x51e   : > { %1282 = vmatpush3.bf16.xpose.msra.mxu0 %v861_v36  ;;  %1293 = vmatprep.subr.bf16.mxu1 %v1447_v35  ;;  %v854_v3 = vld [vmem:[#allocation3 + $0x10] sm:$0xff]  ;;  %v870_v19 = vsel %vm856_vm4, %v855_v13, 0  ;;  %s1176_s22 = sshll.u32 %s847_s20, 3  ;;  %v934_v48 = vld [vmem:[#allocation4 + $0x8] sm:$0xff]  ;;  %v1392_v58 = vld [vmem:[%s1756_s5] sm:$0xff]  }
 0x51f   : > { %1283 = vmatprep.subr.bf16.mxu0 %v1447_v35  ;;  %1301 = vmatprep.mubr.msk.bf16.mxu1 %vm1448_vm5, %v1447_v35  ;;  %v867_v6 = vsel %vm856_vm4, %v854_v3, 0  ;;  %s850_s28 = scalar_lea.vmem [#allocation2], %s1176_s22  ;;  %v935_v49 = vld [vmem:[#allocation4 + $0x10] sm:$0xff]  ;;  %v1393_v9 = vld [vmem:[%s1756_s5 + $0x8] sm:$0xff]   ;;  %v1179_v1 = vld [vmem:[%s1753_s2 + $0x2] ss:$0 sm:$0xff] }
 0x520   : > { %v851_v38 = vld [vmem:[%s850_s28] sm:$0xff]  ;;  %1294 = vmatpush3.bf16.msra.mxu1 %v933_v47  ;;  %v846_v15 = vld [vmem:[%s844_s10 + $0x8] sm:$0xff] }
 0x521   : > { %1295 = vmatprep.subr.bf16.mxu1 %v1447_v35  ;;  %v845_v2 = vld [vmem:[%s844_s10] sm:$0xff] }
 0x522   : > { %v936_v50 = vld [vmem:[#allocation4 + $0x18] sm:$0xff] }
 0x524   : > { %1296 = vmatpush3.bf16.msra.mxu1 %v934_v48 }
 0x525   : > { %1297 = vmatprep.subr.bf16.mxu1 %v1447_v35 }
 0x526   : > { %1284 = vmatpush3.bf16.xpose.msra.mxu0 %v864_v4 }
 0x527   : > { %1285 = vmatprep.subr.bf16.mxu0 %v1447_v35 }
 0x528   : > { %1298 = vmatpush3.bf16.msra.mxu1 %v935_v49 }
 0x529   : > { %1299 = vmatprep.subr.bf16.mxu1 %v1447_v35 }
 0x52c   : > { %1300 = vmatpush3.bf16.msra.mxu1 %v936_v50 }
 0x52d   : > { %1305 = vmatprep.subr.bf16.mxu1 %v1447_v35 }
 0x52e   : > { %1286 = vmatpush3.bf16.xpose.msra.mxu0 %v867_v6 }
 0x52f   : > { %1287 = vmatprep.subr.bf16.mxu0 %v1447_v35 }
 0x536   : > { %1288 = vmatpush3.bf16.xpose.msra.mxu0 %v870_v19 }
 0x53d   : > { %1290 = vmatmul.mubr.msk.bf16.vlgmr.msra.gmra.mrb[0].mxu0 %vm856_vm4, %v851_v38 }
 0x610   : > { %v906_v39 = vpop.f32.mrb[0].mxu0 }
 0x611   : > { %v1291_v40 = vpop.f32.mrb[1].mxu0  ;;  %v914_v41 = vsel %vm913_vm6, %v906_v39, -inf }
 0x612   : > { %915 = vmax.xlane.f32.xlu0 %v914_v41  ;;  %v909_v42 = vpop.f32.mrb[2].mxu0 }
 0x613   : > { %v1292_v45 = vpop.f32.mrb[3].mxu0  ;;  %v917_v46 = vsel %vm913_vm6, %v909_v42, -inf }
 0x616   : > { %918 = vmax.xlane.f32.xlu0 %v917_v46 }
 0x69f   : > { %v916_v51 = vpop.xlane.xlu0 %915 }
 0x6a0   : > { %v920_v52 = vsub.f32 %v906_v39, %v916_v51 }
 0x6a2   : > { %v922_v44 = vmul.f32 1.442695, %v920_v52 }
 0x6a3   : > { %v919_v53 = vpop.xlane.xlu0 %918 }
 0x6a4   : > { %1394 = vpow2.f32 %v922_v44  ;;  %v921_v54 = vsub.f32 %v909_v42, %v919_v53 }
 0x6a6   : > { %v924_v55 = vmul.f32 1.442695, %v921_v54 }
 0x6a8   : > { %1396 = vpow2.f32 %v924_v55 }
 0x6ae   : > { %v1395_v7 = vpop.eup %1394 }
 0x6af   : > { %v926_v56 = vsel %vm913_vm6, %v1395_v7, 0.0 }
 0x6b0   : > { %927 = vadd.xlane.f32.xlu1 %v926_v56 }
 0x6b2   : > { %v1397_v43 = vpop.eup %1396 }
 0x6b3   : > { %v929_v57 = vsel %vm913_vm6, %v1397_v43, 0.0  ;;  %v932_v8 = vpack.c.bf16 %v1397_v43, %v1395_v7 }
 0x6b4   : > { %930 = vadd.xlane.f32.xlu1 %v929_v57 }
 0x6b5   : > { %1302 = vmatmul.mubr.msk.bf16.vlgmr.msra.gmra.mrb[0].mxu1 %vm913_vm6, %v932_v8 }
 0x6b6   : > { %1309 = vmatprep.mubr.msk.bf16.mxu1 %vm1448_vm5, %v1447_v35  ;;  %1306 = vmatpush3.bf16.msra.mxu1 %v1392_v58 }
 0x6b7   : > { %1307 = vmatprep.subr.bf16.mxu1 %v1447_v35 }
 0x6ba   : > { %1308 = vmatpush3.bf16.msra.mxu1 %v1393_v9 }
 0x73d   : > { %v928_v59 = vpop.xlane.xlu1 %927 }
 0x73e   : > { %1398 = vrcp.f32 %v928_v59 }
 0x741   : > { %v931_v10 = vpop.xlane.xlu1 %930 }
 0x742   : > { %1400 = vrcp.f32 %v931_v10 }
 0x748   : > { %v1399_v17 = vpop.eup %1398 }
 0x74c   : > { %v1401_v25 = vpop.eup %1400 }
 0x788   : > { %v974_v14 = vpop.f32.mrb[0].mxu1 }
 0x789   : > { %v1303_v22 = vpop.f32.mrb[1].mxu1  ;;  %v983_v61 = vmul.f32 %v1399_v17, %v974_v14 }
 0x78a   : > { %v977_v60 = vpop.f32.mrb[2].mxu1 }
 0x78b   : > { %v984_v62 = vmul.f32 %v1401_v25, %v977_v60  ;;  %v1304_v63 = vpop.f32.mrb[3].mxu1 }
 0x78d   : > { %v985_v0 = vpack.c.bf16 %v984_v62, %v983_v61 }
 0x78f   : > { %1310 = vmatmul.mubr.msk.bf16.vlgmr.msra.gmra.mrb[4].mxu1 %vm856_vm4, %v985_v0 }
 0x862   : > { %v1044_v5 = vpop.f32.mrb[4].mxu1 }
 0x863   : > { %v1045_v11 = vadd.f32 %v1179_v1, %v1044_v5  ;;  %v1311_v12 = vpop.f32.mrb[5].mxu1 }
 0x864   : > { %v1047_v16 = vpop.f32.mrb[6].mxu1 }
 0x865   : > { %v1051_v18 = vadd.f32 %v1045_v11, %v845_v2  ;;  %v1048_v20 = vadd.f32 %v1179_v1, %v1047_v16  ;;  %v1312_v21 = vpop.f32.mrb[7].mxu1 }
 0x867   : > { %1053 = vst.msk [vmem:[%s1525_s14] sm:$0xff] %vm856_vm4, %v1051_v18  ;;  %v1052_v23 = vadd.f32 %v1048_v20, %v846_v15 }
 0x869   : > { %1054 = vst.msk [vmem:[%s1525_s14 + $0x8] sm:$0xff] %vm856_vm4, %v1052_v23 }
 0x86a PF: > { %s16_s25 = sadd.s32 1, %s1440_s25   ;;  %s1760_s21 = smov %s1432_s23 }
 0x86b   : > { %p13_p8 = scmp.ge.s32.totalorder %s16_s25, 10   ;;  %s1761_s22 = smov %s1436_s24 }
 0x86c   : > { %s1762_s23 = smov %s1765_s26  ;;  %s1763_s24 = smov %s1769_s27 }
 0x86d   :  { %15 = sbr.rel (!%p13_p8) target bundleno = 3 (0x3), region = 80 }

// kernel: tpu_custom_call.1
= control target key start
LH: loop header
LB: loop body
LE: loop exit
PB: predicated region body
PF: predicated region fallthrough
CT: control target
= control target key end

     0   :  { %s1482_s21 = smov 0   ;;  %s1484_s22 = smov 0   ;;  %s1749_s0 = inlined_call_operand.vmem [shape: f32[2,64,32], index: 0, kind: input, shape index: {}]   ;;  %s1750_s1 = inlined_call_operand.vmem [shape: f32[32,16], index: 1, kind: input, shape index: {}]   ;;  %s1751_s2 = inlined_call_operand.vmem [shape: f32[8,32], index: 2, kind: input, shape index: {}]   ;;  %s1752_s3 = inlined_call_operand.vmem [shape: bf16[32,96], index: 3, kind: input, shape index: {}]   ;;  %s1753_s4 = inlined_call_operand.vmem [shape: f32[1,96], index: 4, kind: input, shape index: {}]   ;;  %s1754_s5 = inlined_call_operand.vmem [shape: bf16[32,32], index: 5, kind: input, shape index: {}]   ;;  %s1755_s6 = inlined_call_operand.vmem [shape: f32[2,64,32], index: 6, kind: output, shape index: {}]  }
   0x1   :  { %s1486_s23 = smov 0   ;;  %s1488_s24 = smov 0  }
   0x2   :  { %s1490_s25 = smov 0  }
   0x3 LB: > { %s25_s26 = sadd.s32 1, %s1430_s23  ;;  %s28_s27 = sadd.s32 1, %s1434_s24  ;;  %s1438_s25 = sphi %s1490_s25, %s16_s25   ;;  %s1434_s24 = sphi %s1488_s24, %s1761_s24   ;;  %s1430_s23 = sphi %s1486_s23, %s1760_s23   ;;  %s1426_s22 = sphi %s1484_s22, %s1759_s22   ;;  %s1422_s21 = sphi %s1482_s21, %s1758_s21  }
   0x4   : > { %p26_p0 = scmp.ge.s32.totalorder %s25_s26, 4  ;;  %p1147_p1 = scmp.ge.s32.totalorder %s1438_s25, 1 }
   0x5   : > { %p226_p2 = scmp.lt.s32.totalorder %s1438_s25, 9 }
   0x6   : > { %s1763_s26 = smov (%p26_p0, %s25_s26), 0  ;;  %s1765_s27 = smov (!%p26_p0, %s28_s27), %s1434_s24 }
   0x7   : > { %p227_p3 = pnand %p1147_p1, %p226_p2  ;;  %p30_p4 = scmp.ge.s32.totalorder %s1765_s27, 2 }
   0x8   : > { %p260_p5 = scmp.lt.s32.totalorder (!%p227_p3), %s1426_s22, 1  ;;  %s1150_s28 = sshll.u32 (!%p227_p3), %s1422_s21, 1 }
   0x9   : > { %s1767_s27 = smov (%p30_p4, %s1765_s27), 0  ;;  %230 = sbr.rel (%p227_p3) target bundleno = 2154 (0x86a), region = 44 }
   0xa   : > { %p268_p6 = scmp.lt.s32.totalorder (!%p227_p3), %s1150_s28, 7  ;;  %p1153_p7 = scmp.ne.s32.totalorder (!%p227_p3), %s1422_s21, 0 }
  0x10   : > { %s1769_s22 = smov (!%p260_p5, %s1426_s22), 1  ;;  %s1771_s28 = smov (!%p268_p6, %s1150_s28), 7 }
  0x11   : > { %s1183_s29 = sshll.u32 %s1769_s22, 6  ;;  %s1151_s30 = sshll.u32 %s1769_s22, 3  ;;  %v311_v0 = vld [vmem:[%s1750_s1] sm:$0xff] (!%p1153_p7)  ;;  %v312_v1 = vld [vmem:[%s1750_s1 + $0x8] sm:$0xff] (!%p1153_p7)  ;;  %v313_v2 = vld [vmem:[%s1750_s1 + $0x10] sm:$0xff] (!%p1153_p7)  ;;  %v1440_v3 = vmov (!%p1153_p7), 0.0|0.0   ;;  %v475_v41 = vlaneseq (!%p1153_p7) }
  0x12   : > { %s1518_s9 = scalar_lea.vmem %s1749_s0, %s1183_s29  ;;  %s271_s10 = sadd.s32 %s1151_s30, %s1771_s28  ;;  %1311 = vmatprep.subr.bf16.mxu0 (!%p1153_p7), %v1440_v3  ;;  %v1536_v4 = vpack.c.bf16 (!%p1153_p7), %v312_v1, %v311_v0  ;;  %v314_v5 = vld [vmem:[%s1750_s1 + $0x18] sm:$0xff] (!%p1153_p7)  ;;  %vm1441_vm0 = vmmov (!%p1153_p7), 0   ;;  %v1442_v6 = vmov (!%p1153_p7), 0.0   ;;  %vm288_vm1 = vcmask (!%p1153_p7), 261120   ;;  %1317 = vmatprep.subr.bf16.mxu1 (!%p1153_p7), %v1440_v3 }
  0x13   : > { %s1152_s11 = sshll.u32 %s271_s10, 3  ;;  %279 = sbr.rel (%p1153_p7) target bundleno = 1308 (0x51c), region = 48  ;;  %1231 = vmatprep.mubr.msk.f32.mxu0 (!%p1153_p7), %vm1441_vm0, %v1442_v6  ;;  %v1544_v7 = vld [vmem:[%s1518_s9] sm:$0xff] (!%p1153_p7)  ;;  %v1547_v8 = vld [vmem:[%s1518_s9 + $0x8] sm:$0xff] (!%p1153_p7)  ;;  %vm389_vm2 = vcmask (!%p1153_p7), 130048   ;;  %v1550_v9 = vld [vmem:[%s1518_s9 + $0x10] sm:$0xff] (!%p1153_p7)  ;;  %1242 = vmatprep.mubr.msk.f32.mxu1 (!%p1153_p7), %vm1441_vm0, %v1442_v6  ;;  %v1563_v13 = vpack.c.bf16 (!%p1153_p7), %v314_v5, %v313_v2 }
  0x14   : > { %s1523_s14 = scalar_lea.vmem %s1755_s6, %s1152_s11  ;;  %v1553_v10 = vld [vmem:[%s1518_s9 + $0x18] sm:$0xff] (!%p1153_p7)  ;;  %v289_v11 = vsel (!%p1153_p7), %vm288_vm1, %v1544_v7, 0.0  ;;  %v290_v12 = vsel (!%p1153_p7), %vm288_vm1, %v1547_v8, 0.0  ;;  %1313 = vmatpush3.bf16.msra.mxu0 (!%p1153_p7), %v1536_v4  ;;  %v1566_v14 = vld [vmem:[%s1518_s9 + $0x20] sm:$0xff] (!%p1153_p7)  ;;  %v292_v16 = vsel (!%p1153_p7), %vm288_vm1, %v1550_v9, 0.0  ;;  %v1572_v17 = vld [vmem:[%s1518_s9 + $0x28] sm:$0xff] (!%p1153_p7) }
  0x15   : > { %v291_v15 = vadd.f32 (!%p1153_p7), %v290_v12, %v289_v11  ;;  %1314 = vmatprep.subr.bf16.mxu0 (!%p1153_p7), %v1440_v3  ;;  %v294_v18 = vsel (!%p1153_p7), %vm288_vm1, %v1553_v10, 0.0  ;;  %vm1578_vm3 = vmpackc.low (!%p1153_p7), %vm389_vm2, %vm389_vm2  ;;  %v296_v21 = vsel (!%p1153_p7), %vm288_vm1, %v1566_v14, 0.0  ;;  %v1590_v22 = vld [vmem:[%s1518_s9 + $0x30] sm:$0xff] (!%p1153_p7)  ;;  %v298_v24 = vsel (!%p1153_p7), %vm288_vm1, %v1572_v17, 0.0  ;;  %v1596_v25 = vld [vmem:[%s1518_s9 + $0x38] sm:$0xff] (!%p1153_p7)  ;;  %s1443_s17 = smov (!%p1153_p7), 64  }
  0x16   : > { %1320 = vmatpush3.bf16.xpose.msk.msra.mxu1 (!%p1153_p7), %vm1578_vm3, %v1536_v4  ;;  %v300_v27 = vsel (!%p1153_p7), %vm288_vm1, %v1590_v22, 0.0  ;;  %v302_v29 = vsel (!%p1153_p7), %vm288_vm1, %v1596_v25, 0.0  ;;  %v476_v42 = vshrl.u32 (!%p1153_p7), %v475_v41, 7  ;;  %s1444_s18 = smov (!%p1153_p7), 96  }
  0x17   : > { %v293_v20 = vadd.f32 (!%p1153_p7), %v292_v16, %v291_v15  ;;  %1321 = vmatprep.subr.bf16.mxu1 (!%p1153_p7), %v1440_v3 }
  0x18   : > { %1316 = vmatpush3.bf16.msra.mxu0 (!%p1153_p7), %v1563_v13  ;;  %v1613_v43 = vsub.s32 (!%p1153_p7), 0, %v476_v42 }
  0x19   : > { %v295_v23 = vadd.f32 (!%p1153_p7), %v294_v18, %v293_v20  ;;  %1325 = vmatprep.subr.bf16.mxu0 (!%p1153_p7), %v1440_v3 }
  0x1b   : > { %v297_v26 = vadd.f32 %v296_v21, %v295_v23 }
  0x1d   : > { %v299_v28 = vadd.f32 %v298_v24, %v297_v26 }
  0x1e   : > { %1324 = vmatpush3.bf16.xpose.msk.msra.mxu1 %vm1578_vm3, %v1563_v13 }
  0x1f   : > { %v301_v30 = vadd.f32 %v300_v27, %v299_v28 }
  0x21   : > { %v303_v31 = vadd.f32 %v302_v29, %v301_v30 }
  0x23   : > { %v304_v32 = vrot.slane %v303_v31, 4 }
  0x25   : > { %v305_v33 = vadd.f32 %v304_v32, %v303_v31 }
  0x27   : > { %v306_v34 = vrot.slane %v305_v33, 2 }
  0x29   : > { %v307_v35 = vadd.f32 %v306_v34, %v305_v33 }
  0x2b   : > { %v308_v36 = vrot.slane %v307_v35, 1 }
  0x2d   : > { %v309_v37 = vadd.f32 %v308_v36, %v307_v35 }
  0x2f   : > { %1232 = vmatmul.mubr.msk.f32.vlgmr.msra.gmra.mrb[0].mxu0 %vm288_vm1, %v309_v37 }
  0x30   : > { %1327 = vmatpush3.bf16.msra.mxu0 %v1536_v4  ;;  %1253 = vmatprep.mubr.msk.f32.mxu0 %vm1441_vm0, %v1442_v6 }
  0x31   : > { %1328 = vmatprep.subr.bf16.mxu0 %v1440_v3 }
  0x34   : > { %1330 = vmatpush3.bf16.msra.mxu0 %v1563_v13 }
  0x35   : > { %1331 = vmatprep.subr.bf16.mxu0 %v1440_v3 }
 0x102   : > { %v384_v38 = vpop.f32.mrb[0].mxu0 }
 0x103   : > { %v388_v39 = vmul.f32 0.0078125, %v384_v38  ;;  %v1233_v40 = vpop.f32.mrb[1].mxu0 }
 0x105   : > { %1243 = vmatmul.mubr.msk.f32.vlgmr.msra.gmra.mrb[0].mxu1 %vm389_vm2, %v388_v39  ;;  %v667_v39 = vld [vmem:[%s1751_s2 + $0x1] sm:$0x1] }
 0x1d8   : > { %v1615_v44 = vpop.f32.mrb[0].mxu1 }
 0x1d9   : > { %v478_v45 = vrot.slane %v1615_v44, %v1613_v43  ;;  %v1244_v46 = vpop.f32.mrb[1].mxu1 }
 0x1db   : > { %v479_v47 = vsub.f32 %v1544_v7, %v478_v45  ;;  %v480_v48 = vsub.f32 %v1547_v8, %v478_v45  ;;  %v481_v49 = vsub.f32 %v1550_v9, %v478_v45  ;;  %v482_v50 = vsub.f32 %v1553_v10, %v478_v45 }
 0x1dc   : > { %v483_v51 = vsub.f32 %v1566_v14, %v478_v45  ;;  %v484_v55 = vsub.f32 %v1572_v17, %v478_v45  ;;  %v485_v60 = vsub.f32 %v1590_v22, %v478_v45  ;;  %v486_v0 = vsub.f32 %v1596_v25, %v478_v45 }
 0x1dd   : > { %v487_v52 = vmul.f32 %v479_v47, %v479_v47  ;;  %v488_v53 = vmul.f32 %v480_v48, %v480_v48  ;;  %v489_v54 = vmul.f32 %v481_v49, %v481_v49  ;;  %v490_v56 = vmul.f32 %v482_v50, %v482_v50 }
 0x1de   : > { %v491_v61 = vmul.f32 %v483_v51, %v483_v51  ;;  %v492_v1 = vmul.f32 %v484_v55, %v484_v55  ;;  %v493_v11 = vmul.f32 %v485_v60, %v485_v60  ;;  %v494_v16 = vmul.f32 %v486_v0, %v486_v0 }
 0x1df   : > { %v495_v57 = vsel %vm288_vm1, %v487_v52, 0.0  ;;  %v496_v58 = vsel %vm288_vm1, %v488_v53, 0.0  ;;  %v498_v62 = vsel %vm288_vm1, %v489_v54, 0.0  ;;  %v500_v2 = vsel %vm288_vm1, %v490_v56, 0.0 }
 0x1e0   : > { %v497_v59 = vadd.f32 %v496_v58, %v495_v57  ;;  %v502_v12 = vsel %vm288_vm1, %v491_v61, 0.0  ;;  %v504_v18 = vsel %vm288_vm1, %v492_v1, 0.0  ;;  %v506_v21 = vsel %vm288_vm1, %v493_v11, 0.0 }
 0x1e1   : > { %v508_v24 = vsel %vm288_vm1, %v494_v16, 0.0 }
 0x1e2   : > { %v499_v63 = vadd.f32 %v498_v62, %v497_v59 }
 0x1e4   : > { %v501_v5 = vadd.f32 %v500_v2, %v499_v63 }
 0x1e6   : > { %v503_v15 = vadd.f32 %v502_v12, %v501_v5 }
 0x1e8   : > { %v505_v20 = vadd.f32 %v504_v18, %v503_v15 }
 0x1ea   : > { %v507_v23 = vadd.f32 %v506_v21, %v505_v20 }
 0x1ec   : > { %v509_v26 = vadd.f32 %v508_v24, %v507_v23 }
 0x1ee   : > { %v510_v27 = vrot.slane %v509_v26, 4 }
 0x1f0   : > { %v511_v28 = vadd.f32 %v510_v27, %v509_v26 }
 0x1f2   : > { %v512_v29 = vrot.slane %v511_v28, 2 }
 0x1f4   : > { %v513_v30 = vadd.f32 %v512_v29, %v511_v28 }
 0x1f6   : > { %v514_v31 = vrot.slane %v513_v30, 1 }
 0x1f8   : > { %v515_v32 = vadd.f32 %v514_v31, %v513_v30 }
 0x1fa   : > { %1254 = vmatmul.mubr.msk.f32.vlgmr.msra.gmra.mrb[2].mxu0 %vm288_vm1, %v515_v32 }
 0x1fb   : > { %1334 = vmatpush3.bf16.xpose.msk.msra.mxu0 %vm1578_vm3, %v1536_v4  ;;  %1264 = vmatprep.mubr.msk.f32.mxu0 %vm1441_vm0, %v1442_v6  ;;  %v1386_v4 = vld [vmem:[%s1752_s3] sm:$0xff]  }
 0x1fc   : > { %1335 = vmatprep.subr.bf16.mxu0 %v1440_v3  ;;  %v1387_v3 = vld [vmem:[%s1752_s3 + $0x8] sm:$0xff]   ;;  %1267 = vmatprep.subr.bf16.mxu1 %v1386_v4  ;;  %v666_v6 = vld [vmem:[%s1751_s2] sm:$0x1] }
 0x1fd   : > { %1268 = vmatpush3.bf16.msra.mxu1 %v1386_v4 }
 0x1fe   : > { %1269 = vmatprep.subr.bf16.mxu1 %v1387_v3 }
 0x201   : > { %1270 = vmatpush3.bf16.msra.mxu1 %v1387_v3 }
 0x203   : > { %1338 = vmatpush3.bf16.xpose.msk.msra.mxu0 %vm1578_vm3, %v1563_v13 }
 0x2cd   : > { %v586_v33 = vpop.f32.mrb[2].mxu0 }
 0x2ce   : > { %v590_v34 = vmul.f32 0.0078125, %v586_v33  ;;  %v1255_v35 = vpop.f32.mrb[3].mxu0 }
 0x2d0   : > { %v591_v36 = vadd.f32 1e-06, %v590_v34 }
 0x2d2   : > { %1388 = vrsqrt.f32 %v591_v36 }
 0x2dc   : > { %v1389_v37 = vpop.eup %1388 }
 0x2dd   : > { %1265 = vmatmul.mubr.msk.f32.vlgmr.msra.gmra.mrb[4].mxu0 %vm389_vm2, %v1389_v37 }
 0x3b0   : > { %v662_v13 = vpop.f32.mrb[4].mxu0 }
 0x3b1   : > { %v668_v19 = vmul.f32 %v666_v6, %v662_v13  ;;  %v1266_v38 = vpop.f32.mrb[5].mxu0 }
 0x3b3   : > { %v669_v40 = vmul.f32 %v668_v19, %v1615_v44  ;;  %v674_v41 = vrot.slane %v668_v19, %v1613_v43 }
 0x3b5   : > { %v670_v42 = vsub.f32 %v667_v39, %v669_v40  ;;  %v675_v45 = vmul.f32 %v674_v41, %v1544_v7  ;;  %v676_v47 = vmul.f32 %v674_v41, %v1547_v8  ;;  %v677_v48 = vmul.f32 %v674_v41, %v1550_v9 }
 0x3b6   : > { %v678_v49 = vmul.f32 %v674_v41, %v1553_v10  ;;  %v679_v50 = vmul.f32 %v674_v41, %v1566_v14  ;;  %v680_v51 = vmul.f32 %v674_v41, %v1572_v17  ;;  %v681_v52 = vmul.f32 %v674_v41, %v1590_v22  ;;  %v1166_v17 = vld [vmem:[%s1753_s4] ss:$0 sm:$0xff] }
 0x3b7   : > { %v686_v46 = vrot.slane %v670_v42, %v1613_v43  ;;  %v682_v44 = vmul.f32 %v674_v41, %v1596_v25 }
 0x3b9   : > { %v687_v53 = vadd.f32 %v686_v46, %v675_v45  ;;  %v688_v54 = vadd.f32 %v686_v46, %v676_v47  ;;  %v689_v55 = vadd.f32 %v686_v46, %v677_v48  ;;  %v690_v7 = vadd.f32 %v686_v46, %v678_v49 }
 0x3ba   : > { %v691_v56 = vadd.f32 %v686_v46, %v679_v50  ;;  %v692_v43 = vadd.f32 %v686_v46, %v680_v51  ;;  %v693_v57 = vadd.f32 %v686_v46, %v681_v52  ;;  %v694_v8 = vadd.f32 %v686_v46, %v682_v44 }
 0x3bb   : > { %v695_v58 = vpack.c.bf16 %v688_v54, %v687_v53  ;;  %v696_v9 = vpack.c.bf16 %v690_v7, %v689_v55 }
 0x3bc   : > { %v697_v59 = vpack.c.bf16 %v692_v43, %v691_v56  ;;  %v698_v10 = vpack.c.bf16 %v694_v8, %v693_v57 }
 0x3bd   : > { %1271 = vmatprep.mubr.msk.bf16.mxu1 %vm288_vm1, %v695_v58 }
 0x3be   : > { %1272 = vmatmul.mubr.msk.bf16.vlgmr.msra.gmra.mrb[4].mxu1 %vm288_vm1, %v696_v9 }
 0x3bf   : > { %1275 = vmatprep.mubr.msk.bf16.mxu1 %vm288_vm1, %v697_v59 }
 0x3c6   : > { %1276 = vmatmul.mubr.msk.bf16.gmra.mrb[8].mxu1 %vm288_vm1, %v698_v10 }
 0x491   : > { %v1273_v14 = vpop.f32.mrb[4].mxu1 }
 0x492   : > { %v768_v22 = vpop.f32.mrb[5].mxu1  ;;  %v777_v60 = vadd.f32 %v1273_v14, %v1166_v17 }
 0x493   : > { %v1274_v25 = vpop.f32.mrb[6].mxu1  ;;  %v769_v63 = vadd.f32 %v1166_v17, %v768_v22 }
 0x494   : > { %v780_v61 = vadd.f32 %v1274_v25, %v1166_v17  ;;  %v771_v62 = vpop.f32.mrb[7].mxu1 }
 0x495   : > { %v772_v0 = vadd.f32 %v1166_v17, %v771_v62 }
 0x496   : > { %v800_v1 = vpack.c.bf16 %v780_v61, %v777_v60 }
 0x497   : > { %v799_v2 = vpack.c.bf16 %v772_v0, %v769_v63 }
 0x498   : > { %804 = vst.msk [vmem:[#allocation2 + $0x8] sm:$0xff] %vm288_vm1, %v800_v1  ;;  %829 = vrot.lane.b32.xlu1 %v800_v1, %s1443_s17  ;;  %813 = vrot.lane.b32.xlu0 %v800_v1, %s1444_s18 }
 0x499   : > { %803 = vst.msk [vmem:[#allocation2] sm:$0xff] %vm288_vm1, %v799_v2  ;;  %v1277_v5 = vpop.f32.mrb[8].mxu1 }
 0x49a   : > { %v784_v11 = vpop.f32.mrb[9].mxu1  ;;  %v793_v15 = vadd.f32 %v1277_v5, %v1166_v17 }
 0x49b   : > { %v1278_v12 = vpop.f32.mrb[10].mxu1  ;;  %v785_v20 = vadd.f32 %v1166_v17, %v784_v11 }
 0x49c   : > { %v796_v16 = vadd.f32 %v1278_v12, %v1166_v17  ;;  %v787_v18 = vpop.f32.mrb[11].mxu1  ;;  %811 = vrot.lane.b32.xlu0 %v799_v2, %s1444_s18 }
 0x49d   : > { %v788_v21 = vadd.f32 %v1166_v17, %v787_v18 }
 0x49e   : > { %v802_v23 = vpack.c.bf16 %v796_v16, %v793_v15 }
 0x49f   : > { %v801_v24 = vpack.c.bf16 %v788_v21, %v785_v20 }
 0x4a0   : > { %806 = vst.msk [vmem:[#allocation2 + $0x18] sm:$0xff] %vm288_vm1, %v802_v23  ;;  %817 = vrot.lane.b32.xlu1 %v802_v23, %s1444_s18  ;;  %827 = vrot.lane.b32.xlu0 %v799_v2, %s1443_s17 }
 0x4a1   : > { %805 = vst.msk [vmem:[#allocation2 + $0x10] sm:$0xff] %vm288_vm1, %v801_v24 }
 0x4a4   : > { %815 = vrot.lane.b32.xlu1 %v801_v24, %s1444_s18  ;;  %831 = vrot.lane.b32.xlu0 %v801_v24, %s1443_s17 }
 0x4a8   : > { %833 = vrot.lane.b32.xlu1 %v802_v23, %s1443_s17 }
 0x50a   : > { %v830_v26 = vpop.permute.xlu1 %829  ;;  %v814_v27 = vpop.permute.xlu0 %813 }
 0x50b   : > { %840 = vst.msk [vmem:[#allocation4 + $0x8] sm:$0xff] %vm288_vm1, %v830_v26  ;;  %824 = vst.msk [vmem:[#allocation3 + $0x8] sm:$0xff] %vm288_vm1, %v814_v27 }
 0x50e   : > { %v812_v28 = vpop.permute.xlu0 %811 }
 0x50f   : > { %823 = vst.msk [vmem:[#allocation3] sm:$0xff] %vm288_vm1, %v812_v28 }
 0x512   : > { %v818_v29 = vpop.permute.xlu1 %817  ;;  %v828_v30 = vpop.permute.xlu0 %827 }
 0x513   : > { %826 = vst.msk [vmem:[#allocation3 + $0x18] sm:$0xff] %vm288_vm1, %v818_v29  ;;  %839 = vst.msk [vmem:[#allocation4] sm:$0xff] %vm288_vm1, %v828_v30 }
 0x516   : > { %v816_v31 = vpop.permute.xlu1 %815  ;;  %v832_v32 = vpop.permute.xlu0 %831 }
 0x517   : > { %825 = vst.msk [vmem:[#allocation3 + $0x10] sm:$0xff] %vm288_vm1, %v816_v31  ;;  %841 = vst.msk [vmem:[#allocation4 + $0x10] sm:$0xff] %vm288_vm1, %v832_v32 }
 0x51a   : > { %v834_v33 = vpop.permute.xlu1 %833 }
 0x51b   : > { %842 = vst.msk [vmem:[#allocation4 + $0x18] sm:$0xff] %vm288_vm1, %v834_v33 }
 0x51c PF: > { %v852_v34 = vld [vmem:[#allocation3] sm:$0xff]  ;;  %vm856_vm4 = vcmask 261120   ;;  %v1445_v35 = vmov 0.0   ;;  %vm1446_vm5 = vmmov 0   ;;  %v853_v37 = vld [vmem:[#allocation3 + $0x8] sm:$0xff]  ;;  %s1173_s19 = sshll.u32 %s1422_s21, 4 }
 0x51d   : > { %1279 = vmatprep.subr.bf16.mxu0 %v1445_v35  ;;  %v861_v36 = vsel %vm856_vm4, %v852_v34, 0  ;;  %1287 = vmatprep.mubr.msk.bf16.mxu0 %vm1446_vm5, %v1445_v35  ;;  %v864_v4 = vsel %vm856_vm4, %v853_v37, 0  ;;  %v855_v13 = vld [vmem:[#allocation3 + $0x18] sm:$0xff]  ;;  %s847_s20 = sshra.s32 %s1173_s19, 4  ;;  %vm913_vm6 = vcmask 523264   ;;  %v933_v47 = vld [vmem:[#allocation4] sm:$0xff]  ;;  %s844_s10 = scalar_lea.vmem %s1518_s9, %s1173_s19 }
 0x51e   : > { %1280 = vmatpush3.bf16.xpose.msra.mxu0 %v861_v36  ;;  %1291 = vmatprep.subr.bf16.mxu1 %v1445_v35  ;;  %v854_v3 = vld [vmem:[#allocation3 + $0x10] sm:$0xff]  ;;  %v870_v19 = vsel %vm856_vm4, %v855_v13, 0  ;;  %s1174_s22 = sshll.u32 %s847_s20, 3  ;;  %v934_v48 = vld [vmem:[#allocation4 + $0x8] sm:$0xff]  ;;  %v1390_v58 = vld [vmem:[%s1754_s5] sm:$0xff]  }
 0x51f   : > { %1281 = vmatprep.subr.bf16.mxu0 %v1445_v35  ;;  %1299 = vmatprep.mubr.msk.bf16.mxu1 %vm1446_vm5, %v1445_v35  ;;  %v867_v6 = vsel %vm856_vm4, %v854_v3, 0  ;;  %s850_s28 = scalar_lea.vmem [#allocation2], %s1174_s22  ;;  %v935_v49 = vld [vmem:[#allocation4 + $0x10] sm:$0xff]  ;;  %v1391_v9 = vld [vmem:[%s1754_s5 + $0x8] sm:$0xff]   ;;  %v1177_v1 = vld [vmem:[%s1751_s2 + $0x2] ss:$0 sm:$0xff] }
 0x520   : > { %v851_v38 = vld [vmem:[%s850_s28] sm:$0xff]  ;;  %1292 = vmatpush3.bf16.msra.mxu1 %v933_v47  ;;  %v846_v15 = vld [vmem:[%s844_s10 + $0x8] sm:$0xff] }
 0x521   : > { %1293 = vmatprep.subr.bf16.mxu1 %v1445_v35  ;;  %v845_v2 = vld [vmem:[%s844_s10] sm:$0xff] }
 0x522   : > { %v936_v50 = vld [vmem:[#allocation4 + $0x18] sm:$0xff] }
 0x524   : > { %1294 = vmatpush3.bf16.msra.mxu1 %v934_v48 }
 0x525   : > { %1295 = vmatprep.subr.bf16.mxu1 %v1445_v35 }
 0x526   : > { %1282 = vmatpush3.bf16.xpose.msra.mxu0 %v864_v4 }
 0x527   : > { %1283 = vmatprep.subr.bf16.mxu0 %v1445_v35 }
 0x528   : > { %1296 = vmatpush3.bf16.msra.mxu1 %v935_v49 }
 0x529   : > { %1297 = vmatprep.subr.bf16.mxu1 %v1445_v35 }
 0x52c   : > { %1298 = vmatpush3.bf16.msra.mxu1 %v936_v50 }
 0x52d   : > { %1303 = vmatprep.subr.bf16.mxu1 %v1445_v35 }
 0x52e   : > { %1284 = vmatpush3.bf16.xpose.msra.mxu0 %v867_v6 }
 0x52f   : > { %1285 = vmatprep.subr.bf16.mxu0 %v1445_v35 }
 0x536   : > { %1286 = vmatpush3.bf16.xpose.msra.mxu0 %v870_v19 }
 0x53d   : > { %1288 = vmatmul.mubr.msk.bf16.vlgmr.msra.gmra.mrb[0].mxu0 %vm856_vm4, %v851_v38 }
 0x610   : > { %v906_v39 = vpop.f32.mrb[0].mxu0 }
 0x611   : > { %v1289_v40 = vpop.f32.mrb[1].mxu0  ;;  %v914_v41 = vsel %vm913_vm6, %v906_v39, -inf }
 0x612   : > { %915 = vmax.xlane.f32.xlu0 %v914_v41  ;;  %v909_v42 = vpop.f32.mrb[2].mxu0 }
 0x613   : > { %v1290_v45 = vpop.f32.mrb[3].mxu0  ;;  %v917_v46 = vsel %vm913_vm6, %v909_v42, -inf }
 0x616   : > { %918 = vmax.xlane.f32.xlu0 %v917_v46 }
 0x69f   : > { %v916_v51 = vpop.xlane.xlu0 %915 }
 0x6a0   : > { %v920_v52 = vsub.f32 %v906_v39, %v916_v51 }
 0x6a2   : > { %v922_v44 = vmul.f32 1.442695, %v920_v52 }
 0x6a3   : > { %v919_v53 = vpop.xlane.xlu0 %918 }
 0x6a4   : > { %1392 = vpow2.f32 %v922_v44  ;;  %v921_v54 = vsub.f32 %v909_v42, %v919_v53 }
 0x6a6   : > { %v924_v55 = vmul.f32 1.442695, %v921_v54 }
 0x6a8   : > { %1394 = vpow2.f32 %v924_v55 }
 0x6ae   : > { %v1393_v7 = vpop.eup %1392 }
 0x6af   : > { %v926_v56 = vsel %vm913_vm6, %v1393_v7, 0.0 }
 0x6b0   : > { %927 = vadd.xlane.f32.xlu1 %v926_v56 }
 0x6b2   : > { %v1395_v43 = vpop.eup %1394 }
 0x6b3   : > { %v929_v57 = vsel %vm913_vm6, %v1395_v43, 0.0  ;;  %v932_v8 = vpack.c.bf16 %v1395_v43, %v1393_v7 }
 0x6b4   : > { %930 = vadd.xlane.f32.xlu1 %v929_v57 }
 0x6b5   : > { %1300 = vmatmul.mubr.msk.bf16.vlgmr.msra.gmra.mrb[0].mxu1 %vm913_vm6, %v932_v8 }
 0x6b6   : > { %1307 = vmatprep.mubr.msk.bf16.mxu1 %vm1446_vm5, %v1445_v35  ;;  %1304 = vmatpush3.bf16.msra.mxu1 %v1390_v58 }
 0x6b7   : > { %1305 = vmatprep.subr.bf16.mxu1 %v1445_v35 }
 0x6ba   : > { %1306 = vmatpush3.bf16.msra.mxu1 %v1391_v9 }
 0x73d   : > { %v928_v59 = vpop.xlane.xlu1 %927 }
 0x73e   : > { %1396 = vrcp.f32 %v928_v59 }
 0x741   : > { %v931_v10 = vpop.xlane.xlu1 %930 }
 0x742   : > { %1398 = vrcp.f32 %v931_v10 }
 0x748   : > { %v1397_v17 = vpop.eup %1396 }
 0x74c   : > { %v1399_v25 = vpop.eup %1398 }
 0x788   : > { %v974_v14 = vpop.f32.mrb[0].mxu1 }
 0x789   : > { %v1301_v22 = vpop.f32.mrb[1].mxu1  ;;  %v983_v61 = vmul.f32 %v1397_v17, %v974_v14 }
 0x78a   : > { %v977_v60 = vpop.f32.mrb[2].mxu1 }
 0x78b   : > { %v984_v62 = vmul.f32 %v1399_v25, %v977_v60  ;;  %v1302_v63 = vpop.f32.mrb[3].mxu1 }
 0x78d   : > { %v985_v0 = vpack.c.bf16 %v984_v62, %v983_v61 }
 0x78f   : > { %1308 = vmatmul.mubr.msk.bf16.vlgmr.msra.gmra.mrb[4].mxu1 %vm856_vm4, %v985_v0 }
 0x862   : > { %v1044_v5 = vpop.f32.mrb[4].mxu1 }
 0x863   : > { %v1045_v11 = vadd.f32 %v1177_v1, %v1044_v5  ;;  %v1309_v12 = vpop.f32.mrb[5].mxu1 }
 0x864   : > { %v1047_v16 = vpop.f32.mrb[6].mxu1 }
 0x865   : > { %v1051_v18 = vadd.f32 %v1045_v11, %v845_v2  ;;  %v1048_v20 = vadd.f32 %v1177_v1, %v1047_v16  ;;  %v1310_v21 = vpop.f32.mrb[7].mxu1 }
 0x867   : > { %1053 = vst.msk [vmem:[%s1523_s14] sm:$0xff] %vm856_vm4, %v1051_v18  ;;  %v1052_v23 = vadd.f32 %v1048_v20, %v846_v15 }
 0x869   : > { %1054 = vst.msk [vmem:[%s1523_s14 + $0x8] sm:$0xff] %vm856_vm4, %v1052_v23 }
 0x86a PF: > { %s16_s25 = sadd.s32 1, %s1438_s25   ;;  %s1758_s21 = smov %s1430_s23 }
 0x86b   : > { %p13_p8 = scmp.ge.s32.totalorder %s16_s25, 10   ;;  %s1759_s22 = smov %s1434_s24 }
 0x86c   : > { %s1760_s23 = smov %s1763_s26  ;;  %s1761_s24 = smov %s1767_s27 }
 0x86d   :  { %15 = sbr.rel (!%p13_p8) target bundleno = 3 (0x3), region = 80 }

</bundles_post_ra>
